<compile_context>
chip_gen: v7x
topology: tpu7x:2x2x1
jax: 0.10.0
libtpu: 0.0.40
codegen_flags: <defaults>
</compile_context>

<pallas_src>
import functools

import jax
import jax.numpy as jnp
from jax import lax
from jax.experimental import pallas as pl
from jax.experimental.pallas import tpu as pltpu

NUM_HEADS = 8
DIM_FEEDFORWARD = 2048   # PyTorch TransformerEncoderLayer default
LN_EPS = 1e-5
MASK_BIAS = -1e30
VMEM_LIMIT = 32 * 1024 * 1024   # safe on v5e/v6e (128 MiB) and v7x (64 MiB)


def _pick_tile(n, cap=256):
    """Largest lane/sublane-friendly tile <= cap dividing n; else the full dim.

    Capping at 256 keeps double-buffered (tile, K<=2048) bf16 blocks within the
    v5e 16 MiB default scoped VMEM and well under v7x's 64 MiB physical VMEM.
    """
    # TODO(synk): for large non-multiple-of-128 dims use a pl.cdiv grid with a
    # masked remainder tile instead of the full-dim fallback.
    for t in (256, 128):
        if t <= cap and n % t == 0:
            return t
    return n


# ---------------------------------------------------------------------------
# Linear: x @ W + b (W already [K, N] bf16); optional fused ReLU.  bf16 out.
# ---------------------------------------------------------------------------
def _linear_kernel(x_ref, w_ref, b_ref, o_ref, *, apply_relu):
    acc = jnp.dot(x_ref[...], w_ref[...], preferred_element_type=jnp.float32)
    acc = acc + b_ref[...]
    if apply_relu:
        acc = jnp.maximum(acc, 0.0)
    o_ref[...] = acc.astype(o_ref.dtype)


def linear(x2d, w_t, b, apply_relu=False, out_dtype=jnp.bfloat16):
    """x2d: [M, K] bf16, w_t: [K, N] bf16 (pre-transposed), b: [N] f32 -> [M, N]."""
    M, K = x2d.shape
    N = w_t.shape[1]
    tm = _pick_tile(M)
    tn = _pick_tile(N)
    kernel = functools.partial(_linear_kernel, apply_relu=apply_relu)
    return pl.pallas_call(
        kernel,
        out_shape=jax.ShapeDtypeStruct((M, N), out_dtype),
        grid=(M // tm, N // tn),
        in_specs=[
            pl.BlockSpec((tm, K), lambda i, j: (i, 0)),
            pl.BlockSpec((K, tn), lambda i, j: (0, j)),
            pl.BlockSpec((1, tn), lambda i, j: (0, j)),
        ],
        out_specs=pl.BlockSpec((tm, tn), lambda i, j: (i, j)),
        compiler_params=pltpu.CompilerParams(
            dimension_semantics=("parallel", "parallel"),
            vmem_limit_bytes=VMEM_LIMIT),
    )(x2d, w_t, b.reshape(1, N))


# ---------------------------------------------------------------------------
# Fused: LayerNorm(residual + x @ W + b)   (out-projection / ff2 epilogue)
# ---------------------------------------------------------------------------
def _linear_add_ln_kernel(x_ref, w_ref, b_ref, r_ref, g_ref, beta_ref, o_ref):
    acc = jnp.dot(x_ref[...], w_ref[...], preferred_element_type=jnp.float32)
    y = acc + b_ref[...] + r_ref[...].astype(jnp.float32)
    mu = jnp.mean(y, axis=-1, keepdims=True)
    var = jnp.mean(jnp.square(y - mu), axis=-1, keepdims=True)
    inv = lax.rsqrt(var + LN_EPS)
    o_ref[...] = ((y - mu) * inv * g_ref[...] + beta_ref[...]).astype(o_ref.dtype)


def linear_add_layernorm(x2d, w_t, b, residual, gamma, beta):
    """LayerNorm(residual + x2d @ w_t + b) over last dim; rows gridded; bf16 out."""
    M, K = x2d.shape
    D = w_t.shape[1]
    tm = _pick_tile(M)
    return pl.pallas_call(
        _linear_add_ln_kernel,
        out_shape=jax.ShapeDtypeStruct((M, D), jnp.bfloat16),
        grid=(M // tm,),
        in_specs=[
            pl.BlockSpec((tm, K), lambda i: (i, 0)),
            pl.BlockSpec((K, D), lambda i: (0, 0)),
            pl.BlockSpec((1, D), lambda i: (0, 0)),
            pl.BlockSpec((tm, D), lambda i: (i, 0)),
            pl.BlockSpec((1, D), lambda i: (0, 0)),
            pl.BlockSpec((1, D), lambda i: (0, 0)),
        ],
        out_specs=pl.BlockSpec((tm, D), lambda i: (i, 0)),
        compiler_params=pltpu.CompilerParams(
            dimension_semantics=("parallel",),
            vmem_limit_bytes=VMEM_LIMIT),
    )(x2d, w_t, b.reshape(1, D), residual, gamma.reshape(1, D), beta.reshape(1, D))


# ---------------------------------------------------------------------------
# Multi-head self-attention: grid over (batch, head), head-major [B, H, S, Dh]
# inputs, dense bf16 MXU matmuls, f32 softmax, full-block output stores.
# ---------------------------------------------------------------------------
def _mha_kernel(q_ref, k_ref, v_ref, bias_ref, o_ref, *, dh):
    # q/k/v refs: [1, 1, S, Dh] bf16;  bias_ref: [1, 1, S] f32;  o_ref: [1, 1, S, Dh]
    scale = 1.0 / float(dh) ** 0.5
    q = q_ref[0, 0]                                       # [S, Dh] bf16
    k = k_ref[0, 0]
    v = v_ref[0, 0]
    # TODO(synk): for long sequences add a KV-tile grid axis with online softmax
    # (flash pattern) instead of the full [S, S] score matrix.
    s = lax.dot_general(q, k, (((1,), (1,)), ((), ())),
                        preferred_element_type=jnp.float32)          # [S, S] f32
    s = s * scale + bias_ref[0]                                      # key-padding bias
    m = jnp.max(s, axis=-1, keepdims=True)
    p = jnp.exp(s - m)
    denom = jnp.sum(p, axis=-1, keepdims=True)
    p = (p * pl.reciprocal(denom, approx=True)).astype(v.dtype)      # bf16 for PV
    o = jnp.dot(p, v, preferred_element_type=jnp.float32)            # [S, Dh]
    o_ref[0, 0] = o.astype(o_ref.dtype)


def mha_attention(q, k, v, bias):
    """q/k/v: [B, H, S, Dh] bf16; bias: [B, 1, S] f32 -> context [B, H, S, Dh] bf16."""
    B, H, S, Dh = q.shape
    kernel = functools.partial(_mha_kernel, dh=Dh)
    return pl.pallas_call(
        kernel,
        out_shape=jax.ShapeDtypeStruct((B, H, S, Dh), q.dtype),
        grid=(B, H),
        in_specs=[
            pl.BlockSpec((1, 1, S, Dh), lambda b, h: (b, h, 0, 0)),
            pl.BlockSpec((1, 1, S, Dh), lambda b, h: (b, h, 0, 0)),
            pl.BlockSpec((1, 1, S, Dh), lambda b, h: (b, h, 0, 0)),
            pl.BlockSpec((1, 1, S), lambda b, h: (b, 0, 0)),
        ],
        out_specs=pl.BlockSpec((1, 1, S, Dh), lambda b, h: (b, h, 0, 0)),
        compiler_params=pltpu.CompilerParams(
            dimension_semantics=("parallel", "parallel"),
            vmem_limit_bytes=VMEM_LIMIT),
    )(q, k, v, bias)


# ---------------------------------------------------------------------------
# Fused final LayerNorm (CLS rows only) + output projection (N padded to 128).
# ---------------------------------------------------------------------------
def _ln_proj_kernel(x_ref, g_ref, b_ref, w_ref, pb_ref, o_ref):
    x = x_ref[...].astype(jnp.float32)
    mu = jnp.mean(x, axis=-1, keepdims=True)
    var = jnp.mean(jnp.square(x - mu), axis=-1, keepdims=True)
    inv = lax.rsqrt(var + LN_EPS)
    xn = (x - mu) * inv * g_ref[...] + b_ref[...]
    o_ref[...] = (jnp.dot(xn.astype(jnp.bfloat16), w_ref[...],
                          preferred_element_type=jnp.float32)
                  + pb_ref[...]).astype(o_ref.dtype)


def layernorm_projection(cls2d, gamma, beta, proj_w_t, proj_b_padded):
    B, D = cls2d.shape
    N = proj_w_t.shape[1]
    vmem = pl.BlockSpec(memory_space=pltpu.MemorySpace.VMEM)
    return pl.pallas_call(
        _ln_proj_kernel,
        out_shape=jax.ShapeDtypeStruct((B, N), jnp.float32),
        in_specs=[vmem] * 5,
        out_specs=vmem,
    )(cls2d, gamma.reshape(1, D), beta.reshape(1, D), proj_w_t,
      proj_b_padded.reshape(1, N))


# ---------------------------------------------------------------------------
# Parameter init (deterministic, synthetic) + forward pass
# ---------------------------------------------------------------------------
def init_params(key, vocab_size, D, out_dim, num_layers=3, ff=DIM_FEEDFORWARD):
    keys = iter(jax.random.split(key, 4 * num_layers + 4))

    def w_t(out_f, in_f, pad_to=None, scale=0.02):
        # PyTorch-style [out, in] weight, pre-transposed to [K=in, N=out] bf16
        # so the MXU sees a lane-aligned RHS and HBM weight traffic halves.
        w = scale * jax.random.normal(next(keys), (out_f, in_f), jnp.float32)
        wt = w.T
        if pad_to is not None and pad_to > out_f:
            wt = jnp.pad(wt, ((0, 0), (0, pad_to - out_f)))   # lane-dense final store
        return jnp.asarray(wt, dtype=jnp.bfloat16)

    n_pad = ((out_dim + 127) // 128) * 128
    params = {
        "embedding": jax.random.normal(next(keys), (vocab_size, D), jnp.float32),
        "layers": [],
        "final_norm_g": jnp.ones((D,), jnp.float32),
        "final_norm_b": jnp.zeros((D,), jnp.float32),
        "proj_w_t": w_t(out_dim, D, pad_to=n_pad),          # [D, n_pad] bf16
        "proj_b": jnp.zeros((out_dim,), jnp.float32),       # unpadded (defines out_dim)
    }
    for _ in range(num_layers):
        params["layers"].append({
            "qkv_w_t": w_t(3 * D, D), "qkv_b": jnp.zeros((3 * D,), jnp.float32),
            "out_w_t": w_t(D, D),     "out_b": jnp.zeros((D,), jnp.float32),
            "ff1_w_t": w_t(ff, D),    "ff1_b": jnp.zeros((ff,), jnp.float32),
            "ff2_w_t": w_t(D, ff),    "ff2_b": jnp.zeros((D,), jnp.float32),
            "ln1_g": jnp.ones((D,), jnp.float32), "ln1_b": jnp.zeros((D,), jnp.float32),
            "ln2_g": jnp.ones((D,), jnp.float32), "ln2_b": jnp.zeros((D,), jnp.float32),
        })
    return params


def encoder_forward(params, input_ids, attention_mask):
    B, S = input_ids.shape
    D = params["embedding"].shape[1]
    H = NUM_HEADS
    Dh = D // H

    # TODO(synk): embedding token-id gather stays in plain JAX (no clean tiled
    # Pallas equivalent worth a kernel at this size).
    x = jnp.take(params["embedding"], input_ids, axis=0)              # [B, S, D] f32

    # src_key_padding_mask = attention_mask.logical_not()  (True = padded key).
    # Fully padded query rows get uniform attention (instead of PyTorch NaNs);
    # those rows are never consumed.
    kpm = jnp.logical_not(attention_mask.astype(bool))                # [B, S]
    bias = jnp.where(kpm, jnp.float32(MASK_BIAS),
                     jnp.float32(0.0))[:, None, :]                    # [B, 1, S]

    x2d = x.reshape(B * S, D).astype(jnp.bfloat16)                    # bf16 residual stream
    for lyr in params["layers"]:
        # --- self-attention block (post-norm) ---
        qkv = linear(x2d, lyr["qkv_w_t"], lyr["qkv_b"])               # [B*S, 3D] bf16
        # TODO(synk): head split/merge transposes stay in XLA; folding them into
        # the QKV / out-proj kernels (head-major out_specs) is a further win.
        qkvh = jnp.transpose(qkv.reshape(B, S, 3, H, Dh),
                             (2, 0, 3, 1, 4))                          # [3, B, H, S, Dh]
        ctx = mha_attention(qkvh[0], qkvh[1], qkvh[2], bias)           # [B, H, S, Dh]
        attn2d = jnp.transpose(ctx, (0, 2, 1, 3)).reshape(B * S, D)    # merged heads
        x2d = linear_add_layernorm(attn2d, lyr["out_w_t"], lyr["out_b"],
                                   x2d, lyr["ln1_g"], lyr["ln1_b"])
        # --- feed-forward block ---
        h = linear(x2d, lyr["ff1_w_t"], lyr["ff1_b"], apply_relu=True)
        x2d = linear_add_layernorm(h, lyr["ff2_w_t"], lyr["ff2_b"],
                                   x2d, lyr["ln2_g"], lyr["ln2_b"])

    # Final TransformerEncoder norm is per-row and only the CLS row is consumed:
    # normalize + project just the CLS rows in one fused kernel.
    cls = x2d.reshape(B, S, D)[:, 0, :]                                # [B, D] bf16
    out_dim = params["proj_b"].shape[0]
    n_pad = params["proj_w_t"].shape[1]
    pb = jnp.pad(params["proj_b"], (0, n_pad - out_dim))
    out = layernorm_projection(cls, params["final_norm_g"],
                               params["final_norm_b"],
                               params["proj_w_t"], pb)                 # [B, n_pad] f32
    return out[:, :out_dim]


if __name__ == "__main__":
    key = jax.random.PRNGKey(0)
    k_param, k_ids = jax.random.split(key)

    vocab_size, embed_dim, output_embed_dim = 100, 32, 64
    B, S = 2, 8

    params = init_params(k_param, vocab_size, embed_dim, output_embed_dim)
    input_ids = jax.random.randint(k_ids, (B, S), 0, vocab_size, dtype=jnp.int32)
    attention_mask = jnp.array([[1, 1, 1, 1, 1, 1, 0, 0],
                                [1, 1, 1, 1, 1, 0, 0, 0]], dtype=jnp.int32)

    fwd = jax.jit(encoder_forward)
    out = jax.block_until_ready(fwd(params, input_ids, attention_mask))
    assert out.shape == (B, output_embed_dim), out.shape
    assert bool(jnp.all(jnp.isfinite(out)))
    print("KERNEL_OK")
</pallas_src>

<mosaic_0001>
module attributes {stable_mosaic.version = 11 : i64} {
  func.func @_linear_kernel(%arg0: i32, %arg1: i32, %arg2: memref<16x32xbf16, #tpu.memory_space<vmem>>, %arg3: memref<32x96xbf16, #tpu.memory_space<vmem>>, %arg4: memref<1x96xf32, #tpu.memory_space<vmem>>, %arg5: memref<16x96xbf16, #tpu.memory_space<vmem>>) attributes {dimension_semantics = [#tpu.dimension_semantics<parallel>, #tpu.dimension_semantics<parallel>], iteration_bounds = array<i64: 1, 1>, scalar_prefetch = 0 : i64, scratch_operands = 0 : i64, tpu.core_type = #tpu.core_type<tc>, window_params = [{transform_indices = @transform_0, window_bounds = array<i64: 16, 32>}, {transform_indices = @transform_1, window_bounds = array<i64: 32, 96>}, {transform_indices = @transform_2, window_bounds = array<i64: 1, 96>}, {transform_indices = @transform_3, window_bounds = array<i64: 16, 96>}]} {
    %c0 = arith.constant 0 : index
    %c0_0 = arith.constant 0 : index
    %0 = vector.load %arg2[%c0, %c0_0] : memref<16x32xbf16, #tpu.memory_space<vmem>>, vector<16x32xbf16>
    %c0_1 = arith.constant 0 : index
    %c0_2 = arith.constant 0 : index
    %1 = vector.load %arg3[%c0_1, %c0_2] : memref<32x96xbf16, #tpu.memory_space<vmem>>, vector<32x96xbf16>
    %cst = arith.constant dense<0.000000e+00> : vector<16x96xf32>
    %2 = tpu.matmul %0, %1, %cst {dimension_numbers = #tpu.dot_dimension_numbers<[1], [0], [0], [1], [0, 0, 1, 1], [], []>} : vector<16x32xbf16>, vector<32x96xbf16>, vector<16x96xf32> -> vector<16x96xf32>
    %c0_3 = arith.constant 0 : index
    %c0_4 = arith.constant 0 : index
    %3 = vector.load %arg4[%c0_3, %c0_4] : memref<1x96xf32, #tpu.memory_space<vmem>>, vector<1x96xf32>
    %4 = vector.broadcast %3 : vector<1x96xf32> to vector<16x96xf32>
    %5 = arith.addf %2, %4 : vector<16x96xf32>
    %6 = arith.truncf %5 : vector<16x96xf32> to vector<16x96xbf16>
    %c0_5 = arith.constant 0 : index
    %c0_6 = arith.constant 0 : index
    %7 = vector.load %arg5[%c0_5, %c0_6] : memref<16x96xbf16, #tpu.memory_space<vmem>>, vector<16x96xbf16>
    tpu.vector_store %arg5[%c0_5, %c0_6], %6 {strides = array<i32>} : memref<16x96xbf16, #tpu.memory_space<vmem>>, vector<16x96xbf16>,
    return
  }
  func.func @transform_0(%arg0: i32, %arg1: i32) -> (i32, i32) {
    %c0_i32 = arith.constant 0 : i32
    %c0_i32_0 = arith.constant 0 : i32
    return %arg0, %c0_i32 : i32, i32
  }
  func.func @transform_1(%arg0: i32, %arg1: i32) -> (i32, i32) {
    %c0_i32 = arith.constant 0 : i32
    %c0_i32_0 = arith.constant 0 : i32
    return %c0_i32, %arg1 : i32, i32
  }
  func.func @transform_2(%arg0: i32, %arg1: i32) -> (i32, i32) {
    %c0_i32 = arith.constant 0 : i32
    %c0_i32_0 = arith.constant 0 : i32
    return %c0_i32, %arg1 : i32, i32
  }
  func.func @transform_3(%arg0: i32, %arg1: i32) -> (i32, i32) {
    %c0_i32 = arith.constant 0 : i32
    return %arg0, %arg1 : i32, i32
  }
}

module attributes {stable_mosaic.version = 11 : i64} {
  func.func @_mha_kernel(%arg0: i32, %arg1: i32, %arg2: memref<1x1x8x4xbf16, #tpu.memory_space<vmem>>, %arg3: memref<1x1x8x4xbf16, #tpu.memory_space<vmem>>, %arg4: memref<1x1x8x4xbf16, #tpu.memory_space<vmem>>, %arg5: memref<1x1x8xf32, #tpu.memory_space<vmem>>, %arg6: memref<1x1x8x4xbf16, #tpu.memory_space<vmem>>) attributes {dimension_semantics = [#tpu.dimension_semantics<parallel>, #tpu.dimension_semantics<parallel>], iteration_bounds = array<i64: 2, 8>, scalar_prefetch = 0 : i64, scratch_operands = 0 : i64, tpu.core_type = #tpu.core_type<tc>, window_params = [{transform_indices = @transform_0, window_bounds = array<i64: 1, 1, 8, 4>}, {transform_indices = @transform_1, window_bounds = array<i64: 1, 1, 8, 4>}, {transform_indices = @transform_2, window_bounds = array<i64: 1, 1, 8, 4>}, {transform_indices = @transform_3, window_bounds = array<i64: 1, 1, 8>}, {transform_indices = @transform_4, window_bounds = array<i64: 1, 1, 8, 4>}]} {
    %c0 = arith.constant 0 : index
    %c0_0 = arith.constant 0 : index
    %c0_1 = arith.constant 0 : index
    %c0_2 = arith.constant 0 : index
    %0 = vector.load %arg2[%c0, %c0_0, %c0_1, %c0_2] : memref<1x1x8x4xbf16, #tpu.memory_space<vmem>>, vector<1x1x8x4xbf16>
    %1 = vector.shape_cast %0 : vector<1x1x8x4xbf16> to vector<8x4xbf16>
    %c0_3 = arith.constant 0 : index
    %c0_4 = arith.constant 0 : index
    %c0_5 = arith.constant 0 : index
    %c0_6 = arith.constant 0 : index
    %2 = vector.load %arg3[%c0_3, %c0_4, %c0_5, %c0_6] : memref<1x1x8x4xbf16, #tpu.memory_space<vmem>>, vector<1x1x8x4xbf16>
    %3 = vector.shape_cast %2 : vector<1x1x8x4xbf16> to vector<8x4xbf16>
    %c0_7 = arith.constant 0 : index
    %c0_8 = arith.constant 0 : index
    %c0_9 = arith.constant 0 : index
    %c0_10 = arith.constant 0 : index
    %4 = vector.load %arg4[%c0_7, %c0_8, %c0_9, %c0_10] : memref<1x1x8x4xbf16, #tpu.memory_space<vmem>>, vector<1x1x8x4xbf16>
    %5 = vector.shape_cast %4 : vector<1x1x8x4xbf16> to vector<8x4xbf16>
    %cst = arith.constant dense<0.000000e+00> : vector<8x8xf32>
    %6 = tpu.matmul %1, %3, %cst {dimension_numbers = #tpu.dot_dimension_numbers<[1], [1], [0], [0], [0, 0, 1, 0], [], []>} : vector<8x4xbf16>, vector<8x4xbf16>, vector<8x8xf32> -> vector<8x8xf32>
    %cst_11 = arith.constant 5.000000e-01 : f32
    %7 = vector.broadcast %cst_11 : f32 to vector<8x8xf32>
    %8 = arith.mulf %6, %7 : vector<8x8xf32>
    %c0_12 = arith.constant 0 : index
    %c0_13 = arith.constant 0 : index
    %c0_14 = arith.constant 0 : index
    %9 = vector.load %arg5[%c0_12, %c0_13, %c0_14] : memref<1x1x8xf32, #tpu.memory_space<vmem>>, vector<1x1x8xf32>
    %10 = vector.shape_cast %9 : vector<1x1x8xf32> to vector<1x8xf32>
    %11 = vector.broadcast %10 : vector<1x8xf32> to vector<8x8xf32>
    %12 = arith.addf %8, %11 : vector<8x8xf32>
    %cst_15 = arith.constant dense<0xFF800000> : vector<8xf32>
    %13 = vector.multi_reduction <maximumf>, %12, %cst_15 [1] : vector<8x8xf32> to vector<8xf32>
    %14 = vector.shape_cast %13 : vector<8xf32> to vector<8x1xf32>
    %15 = vector.broadcast %14 : vector<8x1xf32> to vector<8x8xf32>
    %16 = arith.subf %12, %15 : vector<8x8xf32>
    %17 = math.exp %16 : vector<8x8xf32>
    %cst_16 = arith.constant dense<0.000000e+00> : vector<8xf32>
    %18 = vector.multi_reduction <add>, %17, %cst_16 [1] : vector<8x8xf32> to vector<8xf32>
    %19 = vector.shape_cast %18 : vector<8xf32> to vector<8x1xf32>
    %20 = tpu.reciprocal %19 {approx = true} : vector<8x1xf32> -> vector<8x1xf32>
    %21 = vector.broadcast %20 : vector<8x1xf32> to vector<8x8xf32>
    %22 = arith.mulf %17, %21 : vector<8x8xf32>
    %23 = arith.truncf %22 : vector<8x8xf32> to vector<8x8xbf16>
    %cst_17 = arith.constant dense<0.000000e+00> : vector<8x4xf32>
    %24 = tpu.matmul %23, %5, %cst_17 {dimension_numbers = #tpu.dot_dimension_numbers<[1], [0], [0], [1], [0, 0, 1, 1], [], []>} : vector<8x8xbf16>, vector<8x4xbf16>, vector<8x4xf32> -> vector<8x4xf32>
    %25 = arith.truncf %24 : vector<8x4xf32> to vector<8x4xbf16>
    %c0_18 = arith.constant 0 : index
    %c0_19 = arith.constant 0 : index
    %c0_20 = arith.constant 0 : index
    %c0_21 = arith.constant 0 : index
    %26 = vector.load %arg6[%c0_18, %c0_19, %c0_20, %c0_21] : memref<1x1x8x4xbf16, #tpu.memory_space<vmem>>, vector<1x1x8x4xbf16>
    %27 = vector.shape_cast %26 : vector<1x1x8x4xbf16> to vector<8x4xbf16>
    %28 = vector.shape_cast %25 : vector<8x4xbf16> to vector<1x1x8x4xbf16>
    tpu.vector_store %arg6[%c0_18, %c0_19, %c0_20, %c0_21], %28 {strides = array<i32>} : memref<1x1x8x4xbf16, #tpu.memory_space<vmem>>, vector<1x1x8x4xbf16>,
    return
  }
  func.func @transform_0(%arg0: i32, %arg1: i32) -> (i32, i32, i32, i32) {
    %c0_i32 = arith.constant 0 : i32
    %c0_i32_0 = arith.constant 0 : i32
    %c0_i32_1 = arith.constant 0 : i32
    return %arg0, %arg1, %c0_i32, %c0_i32_0 : i32, i32, i32, i32
  }
  func.func @transform_1(%arg0: i32, %arg1: i32) -> (i32, i32, i32, i32) {
    %c0_i32 = arith.constant 0 : i32
    %c0_i32_0 = arith.constant 0 : i32
    %c0_i32_1 = arith.constant 0 : i32
    return %arg0, %arg1, %c0_i32, %c0_i32_0 : i32, i32, i32, i32
  }
  func.func @transform_2(%arg0: i32, %arg1: i32) -> (i32, i32, i32, i32) {
    %c0_i32 = arith.constant 0 : i32
    %c0_i32_0 = arith.constant 0 : i32
    %c0_i32_1 = arith.constant 0 : i32
    return %arg0, %arg1, %c0_i32, %c0_i32_0 : i32, i32, i32, i32
  }
  func.func @transform_3(%arg0: i32, %arg1: i32) -> (i32, i32, i32) {
    %c0_i32 = arith.constant 0 : i32
    %c0_i32_0 = arith.constant 0 : i32
    %c0_i32_1 = arith.constant 0 : i32
    return %arg0, %c0_i32, %c0_i32_0 : i32, i32, i32
  }
  func.func @transform_4(%arg0: i32, %arg1: i32) -> (i32, i32, i32, i32) {
    %c0_i32 = arith.constant 0 : i32
    %c0_i32_0 = arith.constant 0 : i32
    %c0_i32_1 = arith.constant 0 : i32
    return %arg0, %arg1, %c0_i32, %c0_i32_0 : i32, i32, i32, i32
  }
}

module attributes {stable_mosaic.version = 11 : i64} {
  func.func @_linear_add_ln_kernel(%arg0: i32, %arg1: memref<16x32xbf16, #tpu.memory_space<vmem>>, %arg2: memref<32x32xbf16, #tpu.memory_space<vmem>>, %arg3: memref<1x32xf32, #tpu.memory_space<vmem>>, %arg4: memref<16x32xbf16, #tpu.memory_space<vmem>>, %arg5: memref<1x32xf32, #tpu.memory_space<vmem>>, %arg6: memref<1x32xf32, #tpu.memory_space<vmem>>, %arg7: memref<16x32xbf16, #tpu.memory_space<vmem>>) attributes {dimension_semantics = [#tpu.dimension_semantics<parallel>], iteration_bounds = array<i64: 1>, scalar_prefetch = 0 : i64, scratch_operands = 0 : i64, tpu.core_type = #tpu.core_type<tc>, window_params = [{transform_indices = @transform_0, window_bounds = array<i64: 16, 32>}, {pipeline_mode = #tpu.pipeline_mode<synchronous>, transform_indices = @transform_1, window_bounds = array<i64: 32, 32>}, {pipeline_mode = #tpu.pipeline_mode<synchronous>, transform_indices = @transform_2, window_bounds = array<i64: 1, 32>}, {transform_indices = @transform_3, window_bounds = array<i64: 16, 32>}, {pipeline_mode = #tpu.pipeline_mode<synchronous>, transform_indices = @transform_4, window_bounds = array<i64: 1, 32>}, {pipeline_mode = #tpu.pipeline_mode<synchronous>, transform_indices = @transform_5, window_bounds = array<i64: 1, 32>}, {transform_indices = @transform_6, window_bounds = array<i64: 16, 32>}]} {
    %c0 = arith.constant 0 : index
    %c0_0 = arith.constant 0 : index
    %0 = vector.load %arg1[%c0, %c0_0] : memref<16x32xbf16, #tpu.memory_space<vmem>>, vector<16x32xbf16>
    %c0_1 = arith.constant 0 : index
    %c0_2 = arith.constant 0 : index
    %1 = vector.load %arg2[%c0_1, %c0_2] : memref<32x32xbf16, #tpu.memory_space<vmem>>, vector<32x32xbf16>
    %cst = arith.constant dense<0.000000e+00> : vector<16x32xf32>
    %2 = tpu.matmul %0, %1, %cst {dimension_numbers = #tpu.dot_dimension_numbers<[1], [0], [0], [1], [0, 0, 1, 1], [], []>} : vector<16x32xbf16>, vector<32x32xbf16>, vector<16x32xf32> -> vector<16x32xf32>
    %c0_3 = arith.constant 0 : index
    %c0_4 = arith.constant 0 : index
    %3 = vector.load %arg3[%c0_3, %c0_4] : memref<1x32xf32, #tpu.memory_space<vmem>>, vector<1x32xf32>
    %4 = vector.broadcast %3 : vector<1x32xf32> to vector<16x32xf32>
    %5 = arith.addf %2, %4 : vector<16x32xf32>
    %c0_5 = arith.constant 0 : index
    %c0_6 = arith.constant 0 : index
    %6 = vector.load %arg4[%c0_5, %c0_6] : memref<16x32xbf16, #tpu.memory_space<vmem>>, vector<16x32xbf16>
    %7 = arith.extf %6 : vector<16x32xbf16> to vector<16x32xf32>
    %8 = arith.addf %5, %7 : vector<16x32xf32>
    %cst_7 = arith.constant dense<0.000000e+00> : vector<16xf32>
    %9 = vector.multi_reduction <add>, %8, %cst_7 [1] : vector<16x32xf32> to vector<16xf32>
    %10 = vector.shape_cast %9 : vector<16xf32> to vector<16x1xf32>
    %cst_8 = arith.constant 3.200000e+01 : f32
    %11 = vector.broadcast %cst_8 : f32 to vector<16x1xf32>
    %12 = arith.divf %10, %11 : vector<16x1xf32>
    %13 = vector.broadcast %12 : vector<16x1xf32> to vector<16x32xf32>
    %14 = arith.subf %8, %13 : vector<16x32xf32>
    %15 = arith.mulf %14, %14 : vector<16x32xf32>
    %cst_9 = arith.constant dense<0.000000e+00> : vector<16xf32>
    %16 = vector.multi_reduction <add>, %15, %cst_9 [1] : vector<16x32xf32> to vector<16xf32>
    %17 = vector.shape_cast %16 : vector<16xf32> to vector<16x1xf32>
    %cst_10 = arith.constant 3.200000e+01 : f32
    %18 = vector.broadcast %cst_10 : f32 to vector<16x1xf32>
    %19 = arith.divf %17, %18 : vector<16x1xf32>
    %cst_11 = arith.constant 9.99999974E-6 : f32
    %20 = vector.broadcast %cst_11 : f32 to vector<16x1xf32>
    %21 = arith.addf %19, %20 : vector<16x1xf32>
    %22 = math.rsqrt %21 : vector<16x1xf32>
    %23 = vector.broadcast %12 : vector<16x1xf32> to vector<16x32xf32>
    %24 = arith.subf %8, %23 : vector<16x32xf32>
    %25 = vector.broadcast %22 : vector<16x1xf32> to vector<16x32xf32>
    %26 = arith.mulf %24, %25 : vector<16x32xf32>
    %c0_12 = arith.constant 0 : index
    %c0_13 = arith.constant 0 : index
    %27 = vector.load %arg5[%c0_12, %c0_13] : memref<1x32xf32, #tpu.memory_space<vmem>>, vector<1x32xf32>
    %28 = vector.broadcast %27 : vector<1x32xf32> to vector<16x32xf32>
    %29 = arith.mulf %26, %28 : vector<16x32xf32>
    %c0_14 = arith.constant 0 : index
    %c0_15 = arith.constant 0 : index
    %30 = vector.load %arg6[%c0_14, %c0_15] : memref<1x32xf32, #tpu.memory_space<vmem>>, vector<1x32xf32>
    %31 = vector.broadcast %30 : vector<1x32xf32> to vector<16x32xf32>
    %32 = arith.addf %29, %31 : vector<16x32xf32>
    %33 = arith.truncf %32 : vector<16x32xf32> to vector<16x32xbf16>
    %c0_16 = arith.constant 0 : index
    %c0_17 = arith.constant 0 : index
    %34 = vector.load %arg7[%c0_16, %c0_17] : memref<16x32xbf16, #tpu.memory_space<vmem>>, vector<16x32xbf16>
    tpu.vector_store %arg7[%c0_16, %c0_17], %33 {strides = array<i32>} : memref<16x32xbf16, #tpu.memory_space<vmem>>, vector<16x32xbf16>,
    return
  }
  func.func @transform_0(%arg0: i32) -> (i32, i32) {
    %c0_i32 = arith.constant 0 : i32
    %c0_i32_0 = arith.constant 0 : i32
    return %arg0, %c0_i32 : i32, i32
  }
  func.func @transform_1(%arg0: i32) -> (i32, i32) {
    %c0_i32 = arith.constant 0 : i32
    %c0_i32_0 = arith.constant 0 : i32
    %c0_i32_1 = arith.constant 0 : i32
    return %c0_i32, %c0_i32_0 : i32, i32
  }
  func.func @transform_2(%arg0: i32) -> (i32, i32) {
    %c0_i32 = arith.constant 0 : i32
    %c0_i32_0 = arith.constant 0 : i32
    %c0_i32_1 = arith.constant 0 : i32
    return %c0_i32, %c0_i32_0 : i32, i32
  }
  func.func @transform_3(%arg0: i32) -> (i32, i32) {
    %c0_i32 = arith.constant 0 : i32
    %c0_i32_0 = arith.constant 0 : i32
    return %arg0, %c0_i32 : i32, i32
  }
  func.func @transform_4(%arg0: i32) -> (i32, i32) {
    %c0_i32 = arith.constant 0 : i32
    %c0_i32_0 = arith.constant 0 : i32
    %c0_i32_1 = arith.constant 0 : i32
    return %c0_i32, %c0_i32_0 : i32, i32
  }
  func.func @transform_5(%arg0: i32) -> (i32, i32) {
    %c0_i32 = arith.constant 0 : i32
    %c0_i32_0 = arith.constant 0 : i32
    %c0_i32_1 = arith.constant 0 : i32
    return %c0_i32, %c0_i32_0 : i32, i32
  }
  func.func @transform_6(%arg0: i32) -> (i32, i32) {
    %c0_i32 = arith.constant 0 : i32
    %c0_i32_0 = arith.constant 0 : i32
    return %arg0, %c0_i32 : i32, i32
  }
}

module attributes {stable_mosaic.version = 11 : i64} {
  func.func @_linear_kernel(%arg0: i32, %arg1: i32, %arg2: memref<16x32xbf16, #tpu.memory_space<vmem>>, %arg3: memref<32x256xbf16, #tpu.memory_space<vmem>>, %arg4: memref<1x256xf32, #tpu.memory_space<vmem>>, %arg5: memref<16x256xbf16, #tpu.memory_space<vmem>>) attributes {dimension_semantics = [#tpu.dimension_semantics<parallel>, #tpu.dimension_semantics<parallel>], iteration_bounds = array<i64: 1, 8>, scalar_prefetch = 0 : i64, scratch_operands = 0 : i64, tpu.core_type = #tpu.core_type<tc>, window_params = [{transform_indices = @transform_0, window_bounds = array<i64: 16, 32>}, {transform_indices = @transform_1, window_bounds = array<i64: 32, 256>}, {transform_indices = @transform_2, window_bounds = array<i64: 1, 256>}, {transform_indices = @transform_3, window_bounds = array<i64: 16, 256>}]} {
    %c0 = arith.constant 0 : index
    %c0_0 = arith.constant 0 : index
    %0 = vector.load %arg2[%c0, %c0_0] : memref<16x32xbf16, #tpu.memory_space<vmem>>, vector<16x32xbf16>
    %c0_1 = arith.constant 0 : index
    %c0_2 = arith.constant 0 : index
    %1 = vector.load %arg3[%c0_1, %c0_2] : memref<32x256xbf16, #tpu.memory_space<vmem>>, vector<32x256xbf16>
    %cst = arith.constant dense<0.000000e+00> : vector<16x256xf32>
    %2 = tpu.matmul %0, %1, %cst {dimension_numbers = #tpu.dot_dimension_numbers<[1], [0], [0], [1], [0, 0, 1, 1], [], []>} : vector<16x32xbf16>, vector<32x256xbf16>, vector<16x256xf32> -> vector<16x256xf32>
    %c0_3 = arith.constant 0 : index
    %c0_4 = arith.constant 0 : index
    %3 = vector.load %arg4[%c0_3, %c0_4] : memref<1x256xf32, #tpu.memory_space<vmem>>, vector<1x256xf32>
    %4 = vector.broadcast %3 : vector<1x256xf32> to vector<16x256xf32>
    %5 = arith.addf %2, %4 : vector<16x256xf32>
    %cst_5 = arith.constant 0.000000e+00 : f32
    %6 = vector.broadcast %cst_5 : f32 to vector<16x256xf32>
    %7 = arith.maximumf %5, %6 : vector<16x256xf32>
    %8 = arith.truncf %7 : vector<16x256xf32> to vector<16x256xbf16>
    %c0_6 = arith.constant 0 : index
    %c0_7 = arith.constant 0 : index
    %9 = vector.load %arg5[%c0_6, %c0_7] : memref<16x256xbf16, #tpu.memory_space<vmem>>, vector<16x256xbf16>
    tpu.vector_store %arg5[%c0_6, %c0_7], %8 {strides = array<i32>} : memref<16x256xbf16, #tpu.memory_space<vmem>>, vector<16x256xbf16>,
    return
  }
  func.func @transform_0(%arg0: i32, %arg1: i32) -> (i32, i32) {
    %c0_i32 = arith.constant 0 : i32
    %c0_i32_0 = arith.constant 0 : i32
    return %arg0, %c0_i32 : i32, i32
  }
  func.func @transform_1(%arg0: i32, %arg1: i32) -> (i32, i32) {
    %c0_i32 = arith.constant 0 : i32
    %c0_i32_0 = arith.constant 0 : i32
    return %c0_i32, %arg1 : i32, i32
  }
  func.func @transform_2(%arg0: i32, %arg1: i32) -> (i32, i32) {
    %c0_i32 = arith.constant 0 : i32
    %c0_i32_0 = arith.constant 0 : i32
    return %c0_i32, %arg1 : i32, i32
  }
  func.func @transform_3(%arg0: i32, %arg1: i32) -> (i32, i32) {
    %c0_i32 = arith.constant 0 : i32
    return %arg0, %arg1 : i32, i32
  }
}

module attributes {stable_mosaic.version = 11 : i64} {
  func.func @_linear_add_ln_kernel(%arg0: i32, %arg1: memref<16x2048xbf16, #tpu.memory_space<vmem>>, %arg2: memref<2048x32xbf16, #tpu.memory_space<vmem>>, %arg3: memref<1x32xf32, #tpu.memory_space<vmem>>, %arg4: memref<16x32xbf16, #tpu.memory_space<vmem>>, %arg5: memref<1x32xf32, #tpu.memory_space<vmem>>, %arg6: memref<1x32xf32, #tpu.memory_space<vmem>>, %arg7: memref<16x32xbf16, #tpu.memory_space<vmem>>) attributes {dimension_semantics = [#tpu.dimension_semantics<parallel>], iteration_bounds = array<i64: 1>, scalar_prefetch = 0 : i64, scratch_operands = 0 : i64, tpu.core_type = #tpu.core_type<tc>, window_params = [{transform_indices = @transform_0, window_bounds = array<i64: 16, 2048>}, {pipeline_mode = #tpu.pipeline_mode<synchronous>, transform_indices = @transform_1, window_bounds = array<i64: 2048, 32>}, {pipeline_mode = #tpu.pipeline_mode<synchronous>, transform_indices = @transform_2, window_bounds = array<i64: 1, 32>}, {transform_indices = @transform_3, window_bounds = array<i64: 16, 32>}, {pipeline_mode = #tpu.pipeline_mode<synchronous>, transform_indices = @transform_4, window_bounds = array<i64: 1, 32>}, {pipeline_mode = #tpu.pipeline_mode<synchronous>, transform_indices = @transform_5, window_bounds = array<i64: 1, 32>}, {transform_indices = @transform_6, window_bounds = array<i64: 16, 32>}]} {
    %c0 = arith.constant 0 : index
    %c0_0 = arith.constant 0 : index
    %0 = vector.load %arg1[%c0, %c0_0] : memref<16x2048xbf16, #tpu.memory_space<vmem>>, vector<16x2048xbf16>
    %c0_1 = arith.constant 0 : index
    %c0_2 = arith.constant 0 : index
    %1 = vector.load %arg2[%c0_1, %c0_2] : memref<2048x32xbf16, #tpu.memory_space<vmem>>, vector<2048x32xbf16>
    %cst = arith.constant dense<0.000000e+00> : vector<16x32xf32>
    %2 = tpu.matmul %0, %1, %cst {dimension_numbers = #tpu.dot_dimension_numbers<[1], [0], [0], [1], [0, 0, 1, 1], [], []>} : vector<16x2048xbf16>, vector<2048x32xbf16>, vector<16x32xf32> -> vector<16x32xf32>
    %c0_3 = arith.constant 0 : index
    %c0_4 = arith.constant 0 : index
    %3 = vector.load %arg3[%c0_3, %c0_4] : memref<1x32xf32, #tpu.memory_space<vmem>>, vector<1x32xf32>
    %4 = vector.broadcast %3 : vector<1x32xf32> to vector<16x32xf32>
    %5 = arith.addf %2, %4 : vector<16x32xf32>
    %c0_5 = arith.constant 0 : index
    %c0_6 = arith.constant 0 : index
    %6 = vector.load %arg4[%c0_5, %c0_6] : memref<16x32xbf16, #tpu.memory_space<vmem>>, vector<16x32xbf16>
    %7 = arith.extf %6 : vector<16x32xbf16> to vector<16x32xf32>
    %8 = arith.addf %5, %7 : vector<16x32xf32>
    %cst_7 = arith.constant dense<0.000000e+00> : vector<16xf32>
    %9 = vector.multi_reduction <add>, %8, %cst_7 [1] : vector<16x32xf32> to vector<16xf32>
    %10 = vector.shape_cast %9 : vector<16xf32> to vector<16x1xf32>
    %cst_8 = arith.constant 3.200000e+01 : f32
    %11 = vector.broadcast %cst_8 : f32 to vector<16x1xf32>
    %12 = arith.divf %10, %11 : vector<16x1xf32>
    %13 = vector.broadcast %12 : vector<16x1xf32> to vector<16x32xf32>
    %14 = arith.subf %8, %13 : vector<16x32xf32>
    %15 = arith.mulf %14, %14 : vector<16x32xf32>
    %cst_9 = arith.constant dense<0.000000e+00> : vector<16xf32>
    %16 = vector.multi_reduction <add>, %15, %cst_9 [1] : vector<16x32xf32> to vector<16xf32>
    %17 = vector.shape_cast %16 : vector<16xf32> to vector<16x1xf32>
    %cst_10 = arith.constant 3.200000e+01 : f32
    %18 = vector.broadcast %cst_10 : f32 to vector<16x1xf32>
    %19 = arith.divf %17, %18 : vector<16x1xf32>
    %cst_11 = arith.constant 9.99999974E-6 : f32
    %20 = vector.broadcast %cst_11 : f32 to vector<16x1xf32>
    %21 = arith.addf %19, %20 : vector<16x1xf32>
    %22 = math.rsqrt %21 : vector<16x1xf32>
    %23 = vector.broadcast %12 : vector<16x1xf32> to vector<16x32xf32>
    %24 = arith.subf %8, %23 : vector<16x32xf32>
    %25 = vector.broadcast %22 : vector<16x1xf32> to vector<16x32xf32>
    %26 = arith.mulf %24, %25 : vector<16x32xf32>
    %c0_12 = arith.constant 0 : index
    %c0_13 = arith.constant 0 : index
    %27 = vector.load %arg5[%c0_12, %c0_13] : memref<1x32xf32, #tpu.memory_space<vmem>>, vector<1x32xf32>
    %28 = vector.broadcast %27 : vector<1x32xf32> to vector<16x32xf32>
    %29 = arith.mulf %26, %28 : vector<16x32xf32>
    %c0_14 = arith.constant 0 : index
    %c0_15 = arith.constant 0 : index
    %30 = vector.load %arg6[%c0_14, %c0_15] : memref<1x32xf32, #tpu.memory_space<vmem>>, vector<1x32xf32>
    %31 = vector.broadcast %30 : vector<1x32xf32> to vector<16x32xf32>
    %32 = arith.addf %29, %31 : vector<16x32xf32>
    %33 = arith.truncf %32 : vector<16x32xf32> to vector<16x32xbf16>
    %c0_16 = arith.constant 0 : index
    %c0_17 = arith.constant 0 : index
    %34 = vector.load %arg7[%c0_16, %c0_17] : memref<16x32xbf16, #tpu.memory_space<vmem>>, vector<16x32xbf16>
    tpu.vector_store %arg7[%c0_16, %c0_17], %33 {strides = array<i32>} : memref<16x32xbf16, #tpu.memory_space<vmem>>, vector<16x32xbf16>,
    return
  }
  func.func @transform_0(%arg0: i32) -> (i32, i32) {
    %c0_i32 = arith.constant 0 : i32
    %c0_i32_0 = arith.constant 0 : i32
    return %arg0, %c0_i32 : i32, i32
  }
  func.func @transform_1(%arg0: i32) -> (i32, i32) {
    %c0_i32 = arith.constant 0 : i32
    %c0_i32_0 = arith.constant 0 : i32
    %c0_i32_1 = arith.constant 0 : i32
    return %c0_i32, %c0_i32_0 : i32, i32
  }
  func.func @transform_2(%arg0: i32) -> (i32, i32) {
    %c0_i32 = arith.constant 0 : i32
    %c0_i32_0 = arith.constant 0 : i32
    %c0_i32_1 = arith.constant 0 : i32
    return %c0_i32, %c0_i32_0 : i32, i32
  }
  func.func @transform_3(%arg0: i32) -> (i32, i32) {
    %c0_i32 = arith.constant 0 : i32
    %c0_i32_0 = arith.constant 0 : i32
    return %arg0, %c0_i32 : i32, i32
  }
  func.func @transform_4(%arg0: i32) -> (i32, i32) {
    %c0_i32 = arith.constant 0 : i32
    %c0_i32_0 = arith.constant 0 : i32
    %c0_i32_1 = arith.constant 0 : i32
    return %c0_i32, %c0_i32_0 : i32, i32
  }
  func.func @transform_5(%arg0: i32) -> (i32, i32) {
    %c0_i32 = arith.constant 0 : i32
    %c0_i32_0 = arith.constant 0 : i32
    %c0_i32_1 = arith.constant 0 : i32
    return %c0_i32, %c0_i32_0 : i32, i32
  }
  func.func @transform_6(%arg0: i32) -> (i32, i32) {
    %c0_i32 = arith.constant 0 : i32
    %c0_i32_0 = arith.constant 0 : i32
    return %arg0, %c0_i32 : i32, i32
  }
}

module attributes {stable_mosaic.version = 11 : i64} {
  func.func @_ln_proj_kernel(%arg0: memref<2x32xbf16, #tpu.memory_space<vmem>>, %arg1: memref<1x32xf32, #tpu.memory_space<vmem>>, %arg2: memref<1x32xf32, #tpu.memory_space<vmem>>, %arg3: memref<32x128xbf16, #tpu.memory_space<vmem>>, %arg4: memref<1x128xf32, #tpu.memory_space<vmem>>, %arg5: memref<2x128xf32, #tpu.memory_space<vmem>>) attributes {dimension_semantics = [], scalar_prefetch = 0 : i64, scratch_operands = 0 : i64, tpu.core_type = #tpu.core_type<tc>} {
    %c0 = arith.constant 0 : index
    %c0_0 = arith.constant 0 : index
    %0 = vector.load %arg0[%c0, %c0_0] : memref<2x32xbf16, #tpu.memory_space<vmem>>, vector<2x32xbf16>
    %1 = arith.extf %0 : vector<2x32xbf16> to vector<2x32xf32>
    %cst = arith.constant dense<0.000000e+00> : vector<2xf32>
    %2 = vector.multi_reduction <add>, %1, %cst [1] : vector<2x32xf32> to vector<2xf32>
    %3 = vector.shape_cast %2 : vector<2xf32> to vector<2x1xf32>
    %cst_1 = arith.constant 3.200000e+01 : f32
    %4 = vector.broadcast %cst_1 : f32 to vector<2x1xf32>
    %5 = arith.divf %3, %4 : vector<2x1xf32>
    %6 = vector.broadcast %5 : vector<2x1xf32> to vector<2x32xf32>
    %7 = arith.subf %1, %6 : vector<2x32xf32>
    %8 = arith.mulf %7, %7 : vector<2x32xf32>
    %cst_2 = arith.constant dense<0.000000e+00> : vector<2xf32>
    %9 = vector.multi_reduction <add>, %8, %cst_2 [1] : vector<2x32xf32> to vector<2xf32>
    %10 = vector.shape_cast %9 : vector<2xf32> to vector<2x1xf32>
    %cst_3 = arith.constant 3.200000e+01 : f32
    %11 = vector.broadcast %cst_3 : f32 to vector<2x1xf32>
    %12 = arith.divf %10, %11 : vector<2x1xf32>
    %cst_4 = arith.constant 9.99999974E-6 : f32
    %13 = vector.broadcast %cst_4 : f32 to vector<2x1xf32>
    %14 = arith.addf %12, %13 : vector<2x1xf32>
    %15 = math.rsqrt %14 : vector<2x1xf32>
    %16 = vector.broadcast %5 : vector<2x1xf32> to vector<2x32xf32>
    %17 = arith.subf %1, %16 : vector<2x32xf32>
    %18 = vector.broadcast %15 : vector<2x1xf32> to vector<2x32xf32>
    %19 = arith.mulf %17, %18 : vector<2x32xf32>
    %c0_5 = arith.constant 0 : index
    %c0_6 = arith.constant 0 : index
    %20 = vector.load %arg1[%c0_5, %c0_6] : memref<1x32xf32, #tpu.memory_space<vmem>>, vector<1x32xf32>
    %21 = vector.broadcast %20 : vector<1x32xf32> to vector<2x32xf32>
    %22 = arith.mulf %19, %21 : vector<2x32xf32>
    %c0_7 = arith.constant 0 : index
    %c0_8 = arith.constant 0 : index
    %23 = vector.load %arg2[%c0_7, %c0_8] : memref<1x32xf32, #tpu.memory_space<vmem>>, vector<1x32xf32>
    %24 = vector.broadcast %23 : vector<1x32xf32> to vector<2x32xf32>
    %25 = arith.addf %22, %24 : vector<2x32xf32>
    %26 = arith.truncf %25 : vector<2x32xf32> to vector<2x32xbf16>
    %c0_9 = arith.constant 0 : index
    %c0_10 = arith.constant 0 : index
    %27 = vector.load %arg3[%c0_9, %c0_10] : memref<32x128xbf16, #tpu.memory_space<vmem>>, vector<32x128xbf16>
    %cst_11 = arith.constant dense<0.000000e+00> : vector<2x128xf32>
    %28 = tpu.matmul %26, %27, %cst_11 {dimension_numbers = #tpu.dot_dimension_numbers<[1], [0], [0], [1], [0, 0, 1, 1], [], []>} : vector<2x32xbf16>, vector<32x128xbf16>, vector<2x128xf32> -> vector<2x128xf32>
    %c0_12 = arith.constant 0 : index
    %c0_13 = arith.constant 0 : index
    %29 = vector.load %arg4[%c0_12, %c0_13] : memref<1x128xf32, #tpu.memory_space<vmem>>, vector<1x128xf32>
    %30 = vector.broadcast %29 : vector<1x128xf32> to vector<2x128xf32>
    %31 = arith.addf %28, %30 : vector<2x128xf32>
    %c0_14 = arith.constant 0 : index
    %c0_15 = arith.constant 0 : index
    %32 = vector.load %arg5[%c0_14, %c0_15] : memref<2x128xf32, #tpu.memory_space<vmem>>, vector<2x128xf32>
    tpu.vector_store %arg5[%c0_14, %c0_15], %31 {strides = array<i32>} : memref<2x128xf32, #tpu.memory_space<vmem>>, vector<2x128xf32>,
    return
  }
}

</mosaic_0001>

<bundles_post_ra>
// kernel: encoder_forward.17
= control target key start
LH: loop header
LB: loop body
LE: loop exit
PB: predicated region body
PF: predicated region fallthrough
CT: control target
= control target key end

     0   :  { %s706_s15 = smov 0   ;;  %s708_s16 = smov 0   ;;  %s775_s0 = inlined_call_operand.vmem [shape: bf16[2,8,8,4], index: 0, kind: input, shape index: {}]   ;;  %s776_s1 = inlined_call_operand.vmem [shape: bf16[2,8,8,4], index: 1, kind: input, shape index: {}]   ;;  %s777_s2 = inlined_call_operand.vmem [shape: bf16[2,8,8,4], index: 2, kind: input, shape index: {}]   ;;  %s778_s3 = inlined_call_operand.vmem [shape: f32[2,1,8], index: 3, kind: input, shape index: {}]   ;;  %s779_s4 = inlined_call_operand.vmem [shape: bf16[2,8,8,4], index: 4, kind: output, shape index: {}]  }
   0x1   :  { %s710_s17 = smov 0   ;;  %s712_s18 = smov 0  }
   0x2   :  { %s714_s19 = smov 0  }
   0x3 LB: > { %s23_s20 = sadd.s32 1, %s669_s17  ;;  %s26_s21 = sadd.s32 1, %s673_s18  ;;  %s677_s19 = sphi %s714_s19, %s14_s19   ;;  %s673_s18 = sphi %s712_s18, %s783_s18   ;;  %s669_s17 = sphi %s710_s17, %s782_s17   ;;  %s665_s16 = sphi %s708_s16, %s781_s16   ;;  %s661_s15 = sphi %s706_s15, %s780_s15  }
   0x4   : > { %p24_p0 = scmp.ge.s32.totalorder %s23_s20, 8  ;;  %p563_p1 = scmp.ge.s32.totalorder %s677_s19, 1 }
   0x5   : > { %p219_p2 = scmp.lt.s32.totalorder %s677_s19, 17 }
   0x6   : > { %s785_s20 = smov (%p24_p0, %s23_s20), 0  ;;  %s787_s21 = smov (!%p24_p0, %s26_s21), %s673_s18 }
   0x7   : > { %p220_p3 = pnand %p563_p1, %p219_p2  ;;  %p28_p4 = scmp.ge.s32.totalorder %s787_s21, 2 }
   0x8   : > { %p270_p5 = scmp.lt.s32.totalorder (!%p220_p3), %s665_s16, 1  ;;  %p272_p6 = scmp.lt.s32.totalorder (!%p220_p3), %s661_s15, 7  ;;  %v679_v0 = vmov (!%p220_p3), 0.0   ;;  %vm680_vm0 = vmmov (!%p220_p3), 0   ;;  %vm309_vm1 = vcmask (!%p220_p3), 31744   ;;  %vm365_vm2 = vcmask (!%p220_p3), 64512  }
   0x9   : > { %s789_s21 = smov (%p28_p4, %s787_s21), 0  ;;  %223 = sbr.rel (%p220_p3) target bundleno = 777 (0x309), region = 36 }
   0xa   : > { %581 = vmatprep.subr.bf16.mxu0 (!%p220_p3), %v679_v0  ;;  %583 = vmatprep.mubr.msk.bf16.mxu0 (!%p220_p3), %vm680_vm0, %v679_v0  ;;  %vm381_vm3 = vcmask (!%p220_p3), 1043456   ;;  %vm426_vm4 = vcmask (!%p220_p3), 27648  }
   0xb   : > { %587 = vmatprep.subr.bf16.mxu1 (!%p220_p3), %v679_v0  ;;  %589 = vmatprep.mubr.msk.bf16.mxu1 (!%p220_p3), %vm680_vm0, %v679_v0 }
  0x10   : > { %s791_s16 = smov (!%p270_p5, %s665_s16), 1  ;;  %s793_s15 = smov (!%p272_p6, %s661_s15), 7 }
  0x11   : > { %s564_s22 = sshll.u32 %s791_s16, 3  ;;  %s296_s7 = scalar_lea.vmem %s778_s3, %s791_s16 }
  0x12   : > { %s275_s23 = sadd.s32 %s564_s22, %s793_s15  ;;  %v573_v5 = vld [vmem:[%s296_s7] ss:$0 sm:$0xff] }
  0x13   : > { %s736_s24 = sshll.u32 %s275_s23, 2 }
  0x14   : > { %s285_s27 = scalar_lea.vmem %s776_s1, %s736_s24  ;;  %s277_s30 = scalar_lea.vmem %s775_s0, %s736_s24 }
  0x15   : > { %v307_v1 = vld [vmem:[%s285_s27] sm:$0xf]  ;;  %s293_s10 = scalar_lea.vmem %s777_s2, %s736_s24  ;;  %s304_s13 = scalar_lea.vmem %s779_s4, %s736_s24 }
  0x16   : > { %v314_v2 = vsel %vm309_vm1, %v307_v1, 0  ;;  %v306_v3 = vld [vmem:[%s277_s30] sm:$0xf] }
  0x17   : > { %582 = vmatpush3.bf16.xpose.msra.mxu0 %v314_v2  ;;  %v308_v17 = vld [vmem:[%s293_s10] sm:$0xf] }
  0x18   : > { %v383_v18 = vsel %vm381_vm3, %v308_v17, 0 }
  0x19   : > { %588 = vmatpush3.bf16.msra.mxu1 %v383_v18 }
  0x1e   : > { %584 = vmatmul.mubr.msk.bf16.vlgmr.msra.gmra.mrb[0].mxu0 %vm309_vm1, %v306_v3 }
  0xf1   : > { %v350_v4 = vpop.f32.mrb[0].mxu0 }
  0xf2   : > { %v356_v6 = vmul.f32 0.5, %v350_v4  ;;  %v585_v7 = vpop.f32.mrb[1].mxu0 }
  0xf3   : > { %v353_v8 = vpop.f32.mrb[2].mxu0 }
  0xf4   : > { %v586_v9 = vpop.f32.mrb[3].mxu0  ;;  %v364_v10 = vadd.f32 %v573_v5, %v356_v6 }
  0xf6   : > { %v366_v11 = vsel %vm365_vm2, %v364_v10, -inf }
  0xf7   : > { %367 = vmax.xlane.f32.xlu0 %v366_v11 }
 0x184   : > { %v368_v12 = vpop.xlane.xlu0 %367 }
 0x185   : > { %v369_v13 = vsub.f32 %v364_v10, %v368_v12 }
 0x187   : > { %v370_v14 = vmul.f32 1.442695, %v369_v13 }
 0x189   : > { %635 = vpow2.f32 %v370_v14 }
 0x193   : > { %v636_v15 = vpop.eup %635 }
 0x194   : > { %v372_v16 = vsel %vm365_vm2, %v636_v15, 0.0 }
 0x195   : > { %373 = vadd.xlane.f32.xlu0 %v372_v16 }
 0x222   : > { %v374_v19 = vpop.xlane.xlu0 %373 }
 0x223   : > { %637 = vrcp.f32 %v374_v19 }
 0x22d   : > { %v638_v20 = vpop.eup %637 }
 0x22e   : > { %v376_v21 = vmul.f32 %v638_v20, %v636_v15 }
 0x230   : > { %v377_v22 = vpack.c.bf16 %v376_v21, %v376_v21 }
 0x232   : > { %590 = vmatmul.mubr.msk.bf16.vlgmr.msra.gmra.mrb[0].mxu1 %vm365_vm2, %v377_v22 }
 0x305   : > { %v419_v23 = vpop.f32.mrb[0].mxu1 }
 0x306   : > { %v425_v24 = vpack.c.bf16 %v419_v23, %v419_v23  ;;  %v591_v25 = vpop.f32.mrb[1].mxu1 }
 0x307   : > { %v422_v26 = vpop.f32.mrb[2].mxu1 }
 0x308   : > { %427 = vst.msk [vmem:[%s304_s13] sm:$0xf] %vm426_vm4, %v425_v24  ;;  %v592_v27 = vpop.f32.mrb[3].mxu1 }
 0x309 PF: > { %s14_s19 = sadd.s32 1, %s677_s19   ;;  %s780_s15 = smov %s669_s17 }
 0x30a   : > { %p11_p7 = scmp.ge.s32.totalorder %s14_s19, 18   ;;  %s781_s16 = smov %s673_s18 }
 0x30b   : > { %s782_s17 = smov %s785_s20  ;;  %s783_s18 = smov %s789_s21 }
 0x30c   :  { %13 = sbr.rel (!%p11_p7) target bundleno = 3 (0x3), region = 75 }

// kernel: encoder_forward.16
= control target key start
LH: loop header
LB: loop body
LE: loop exit
PB: predicated region body
PF: predicated region fallthrough
CT: control target
= control target key end

     0   :  { %v130_v0 = vmov 0.0   ;;  %vm131_vm0 = vmmov 0   ;;  %vm45_vm1 = vcmask 261120   ;;  %vm98_vm2 = vcmask 781312   ;;  %s170_s1 = inlined_call_operand.vmem [shape: bf16[32,96], index: 1, kind: input, shape index: {}]   ;;  %s171_s0 = inlined_call_operand.vmem [shape: bf16[16,32], index: 0, kind: input, shape index: {}]   ;;  %s172_s2 = inlined_call_operand.vmem [shape: f32[1,96], index: 2, kind: input, shape index: {}]   ;;  %s173_s3 = inlined_call_operand.vmem [shape: bf16[16,96], index: 3, kind: output, shape index: {}]  }
   0x1   :  { %117 = vmatprep.subr.bf16.mxu0 %v130_v0  ;;  %v127_v1 = vld [vmem:[%s170_s1] sm:$0xff]   ;;  %121 = vmatprep.mubr.msk.bf16.mxu0 %vm131_vm0, %v130_v0  ;;  %v128_v2 = vld [vmem:[%s170_s1 + $0x8] sm:$0xff]  }
   0x2   :  { %118 = vmatpush3.bf16.msra.mxu0 %v127_v1  ;;  %v129_v3 = vld [vmem:[%s171_s0] sm:$0xff]  }
   0x3   :  { %119 = vmatprep.subr.bf16.mxu0 %v130_v0  ;;  %v105_v4 = vld [vmem:[%s172_s2] ss:$0 sm:$0xff] }
   0x6   :  { %120 = vmatpush3.bf16.msra.mxu0 %v128_v2 }
   0x9   :  { %122 = vmatmul.mubr.msk.bf16.vlgmr.msra.gmra.mrb[0].mxu0 %vm45_vm1, %v129_v3 }
  0xdc   :  { %v83_v5 = vpop.f32.mrb[0].mxu0 }
  0xdd   :  { %v84_v6 = vadd.f32 %v105_v4, %v83_v5  ;;  %v123_v7 = vpop.f32.mrb[1].mxu0 }
  0xde   :  { %v86_v8 = vpop.f32.mrb[2].mxu0 }
  0xdf   :  { %v112_v9 = vpack.c.bf16 %v84_v6, %v84_v6  ;;  %v87_v10 = vadd.f32 %v105_v4, %v86_v8  ;;  %v124_v11 = vpop.f32.mrb[3].mxu0 }
  0xe1   :  { %99 = vst.msk [vmem:[%s173_s3] sm:$0xf] %vm98_vm2, %v112_v9  ;;  %v113_v12 = vpack.c.bf16 %v87_v10, %v87_v10 }
  0xe3   :  { %100 = vst.msk [vmem:[%s173_s3 + $0x4] sm:$0xf] %vm98_vm2, %v113_v12 }

// kernel: encoder_forward.18
= control target key start
LH: loop header
LB: loop body
LE: loop exit
PB: predicated region body
PF: predicated region fallthrough
CT: control target
= control target key end

     0   :  { %v200_v0 = vmov 0.0   ;;  %vm201_vm0 = vmmov 0   ;;  %vm54_vm1 = vcmask 261120   ;;  %vm158_vm2 = vcmask 257024   ;;  %s269_s1 = inlined_call_operand.vmem [shape: bf16[32,32], index: 1, kind: input, shape index: {}]   ;;  %s270_s0 = inlined_call_operand.vmem [shape: bf16[16,32], index: 0, kind: input, shape index: {}]   ;;  %s271_s3 = inlined_call_operand.vmem [shape: bf16[16,32], index: 3, kind: input, shape index: {}]   ;;  %s272_s2 = inlined_call_operand.vmem [shape: f32[1,32], index: 2, kind: input, shape index: {}]   ;;  %s273_s4 = inlined_call_operand.vmem [shape: f32[1,32], index: 4, kind: input, shape index: {}]   ;;  %s274_s5 = inlined_call_operand.vmem [shape: f32[1,32], index: 5, kind: input, shape index: {}]   ;;  %s275_s6 = inlined_call_operand.vmem [shape: bf16[16,32], index: 6, kind: output, shape index: {}]  }
   0x1   :  { %183 = vmatprep.subr.bf16.mxu0 %v200_v0  ;;  %v193_v1 = vld [vmem:[%s269_s1] sm:$0xff]   ;;  %187 = vmatprep.mubr.msk.bf16.mxu0 %vm201_vm0, %v200_v0  ;;  %v194_v2 = vld [vmem:[%s269_s1 + $0x8] sm:$0xff]  }
   0x2   :  { %184 = vmatpush3.bf16.msra.mxu0 %v193_v1  ;;  %v195_v3 = vld [vmem:[%s270_s0] sm:$0xff]  }
   0x3   :  { %185 = vmatprep.subr.bf16.mxu0 %v200_v0  ;;  %v177_v4 = vld [vmem:[%s271_s3] sm:$0xff]  }
   0x4   :  { %v165_v5 = vld [vmem:[%s272_s2] ss:$0 sm:$0xff]  ;;  %v178_v6 = vunpack.c.l.bf16 %v177_v4  ;;  %v179_v10 = vunpack.c.h.bf16 %v177_v4 }
   0x5   :  { %v170_v35 = vld [vmem:[%s273_s4] ss:$0 sm:$0xff] }
   0x6   :  { %186 = vmatpush3.bf16.msra.mxu0 %v194_v2  ;;  %v171_v37 = vld [vmem:[%s274_s5] ss:$0 sm:$0xff] }
   0x9   :  { %188 = vmatmul.mubr.msk.bf16.vlgmr.msra.gmra.mrb[0].mxu0 %vm54_vm1, %v195_v3 }
  0xdc   :  { %v92_v7 = vpop.f32.mrb[0].mxu0 }
  0xdd   :  { %v93_v8 = vadd.f32 %v165_v5, %v92_v7  ;;  %v189_v9 = vpop.f32.mrb[1].mxu0 }
  0xde   :  { %v95_v11 = vpop.f32.mrb[2].mxu0 }
  0xdf   :  { %v96_v12 = vadd.f32 %v165_v5, %v95_v11  ;;  %v190_v13 = vpop.f32.mrb[3].mxu0  ;;  %v103_v14 = vadd.f32 %v178_v6, %v93_v8 }
  0xe1   :  { %v105_v15 = vsel %vm54_vm1, %v103_v14, 0.0  ;;  %v104_v16 = vadd.f32 %v179_v10, %v96_v12 }
  0xe2   :  { %106 = vadd.xlane.f32.xlu0 %v105_v15 }
  0xe3   :  { %v108_v17 = vsel %vm54_vm1, %v104_v16, 0.0 }
  0xe6   :  { %109 = vadd.xlane.f32.xlu0 %v108_v17 }
 0x16f   :  { %v107_v18 = vpop.xlane.xlu0 %106 }
 0x170   :  { %v112_v19 = vmul.f32 0.03125, %v107_v18 }
 0x172   :  { %v114_v20 = vsub.f32 %v103_v14, %v112_v19 }
 0x173   :  { %v110_v21 = vpop.xlane.xlu0 %109 }
 0x174   :  { %v113_v22 = vmul.f32 0.03125, %v110_v21  ;;  %v116_v23 = vmul.f32 %v114_v20, %v114_v20 }
 0x176   :  { %v115_v24 = vsub.f32 %v104_v16, %v113_v22  ;;  %v118_v25 = vsel %vm54_vm1, %v116_v23, 0.0 }
 0x177   :  { %119 = vadd.xlane.f32.xlu1 %v118_v25 }
 0x178   :  { %v117_v26 = vmul.f32 %v115_v24, %v115_v24 }
 0x17a   :  { %v121_v27 = vsel %vm54_vm1, %v117_v26, 0.0 }
 0x17b   :  { %122 = vadd.xlane.f32.xlu1 %v121_v27 }
 0x204   :  { %v120_v28 = vpop.xlane.xlu1 %119 }
 0x205   :  { %v124_v29 = vmul.f32 0.03125, %v120_v28 }
 0x207   :  { %v126_v30 = vadd.f32 1e-05, %v124_v29 }
 0x208   :  { %v123_v31 = vpop.xlane.xlu1 %122 }
 0x209   :  { %196 = vrsqrt.f32 %v126_v30  ;;  %v125_v32 = vmul.f32 0.03125, %v123_v31 }
 0x20b   :  { %v127_v33 = vadd.f32 1e-05, %v125_v32 }
 0x20d   :  { %198 = vrsqrt.f32 %v127_v33 }
 0x213   :  { %v197_v34 = vpop.eup %196 }
 0x214   :  { %v130_v36 = vmul.f32 %v197_v34, %v114_v20 }
 0x216   :  { %v139_v38 = vmul.f32 %v170_v35, %v130_v36 }
 0x217   :  { %v199_v39 = vpop.eup %198 }
 0x218   :  { %v148_v40 = vadd.f32 %v171_v37, %v139_v38  ;;  %v131_v41 = vmul.f32 %v199_v39, %v115_v24 }
 0x21a   :  { %v174_v42 = vpack.c.bf16 %v148_v40, %v148_v40  ;;  %v140_v43 = vmul.f32 %v170_v35, %v131_v41 }
 0x21c   :  { %159 = vst.msk [vmem:[%s275_s6] sm:$0xf] %vm158_vm2, %v174_v42  ;;  %v149_v44 = vadd.f32 %v171_v37, %v140_v43 }
 0x21e   :  { %v175_v45 = vpack.c.bf16 %v149_v44, %v149_v44 }
 0x220   :  { %160 = vst.msk [vmem:[%s275_s6 + $0x4] sm:$0xf] %vm158_vm2, %v175_v45 }

// kernel: encoder_forward.19
= control target key start
LH: loop header
LB: loop body
LE: loop exit
PB: predicated region body
PF: predicated region fallthrough
CT: control target
= control target key end

     0   :  { %s658_s12 = smov 0   ;;  %s660_s13 = smov 0   ;;  %s737_s0 = inlined_call_operand.vmem [shape: bf16[16,32], index: 0, kind: input, shape index: {}]   ;;  %s738_s1 = inlined_call_operand.vmem [shape: bf16[32,2048], index: 1, kind: input, shape index: {}]   ;;  %s739_s2 = inlined_call_operand.vmem [shape: f32[1,2048], index: 2, kind: input, shape index: {}]   ;;  %s740_s3 = inlined_call_operand.vmem [shape: bf16[16,2048], index: 3, kind: output, shape index: {}]  }
   0x1   :  { %s662_s14 = smov 0   ;;  %s664_s15 = smov 0  }
   0x2   :  { %s666_s16 = smov 0  }
   0x3 LB: > { %s22_s17 = sadd.s32 1, %s631_s15  ;;  %s520_s18 = sadd.s32 4294967295, %s635_s16   ;;  %s635_s16 = sphi %s666_s16, %s13_s16   ;;  %s631_s15 = sphi %s664_s15, %s745_s15   ;;  %s627_s14 = sphi %s662_s14, %s744_s14   ;;  %s623_s13 = sphi %s660_s13, %s743_s13   ;;  %s619_s12 = sphi %s658_s12, %s742_s12  }
   0x4   : > { %p23_p0 = scmp.ge.s32.totalorder %s22_s17, 8  ;;  %p65_p1 = scmp.ne.s32.totalorder %s623_s13, %s619_s12 }
   0x5   : > { %p66_p2 = scmp.eq.s32.totalorder %s635_s16, 0  ;;  %p123_p4 = scmp.eq.s32.totalorder %s520_s18, 7 }
   0x6   : > { %s747_s17 = smov (%p23_p0, %s22_s17), 0  ;;  %s58_s20 = sadd.s32 1, %s623_s13 }
   0x7   : > { %p67_p3 = por %p66_p2, %p65_p1  ;;  %s55_s19 = ssub.s32 %s631_s15, %s747_s17 }
   0x8   : > { %p56_p5 = scmp.eq.s32.totalorder %s55_s19, 0  ;;  %p693_p6 = por %p123_p4, %p65_p1 }
   0x9   : > { %p524_p7 = scmp.ge.s32.totalorder %s635_s16, 8 }
   0xa   : > { %s698_s22 = scalar_select %p56_p5, %s623_s13, %s58_s20  }
   0xb   : > { %154 = sbr.rel (%p524_p7) target bundleno = 26 (0x1a), region = 20 }
  0x12   : > { %157 = sbr.rel (!%p67_p3) target bundleno = 26 (0x1a), region = 24  ;;  %s159_s23 = sand.u32 (%p67_p3), 1, %s623_s13  }
  0x13   : > { %s545_s24 = sshll.u32 (%p67_p3), %s631_s15, 3  ;;  %s525_s25 = sshll.u32 (%p67_p3), %s159_s23, 5 }
  0x14   : > { %s164_s28 = scalar_lea.vmem (%p67_p3), %s738_s1, %s545_s24  ;;  %s161_s29 = scalar_lea.vmem (%p67_p3), [#allocation2], %s525_s25 }
  0x15   : > { %v198_v0 = vld [vmem:[%s164_s28] sm:$0xff] (%p67_p3) }
  0x16   : > { %v200_v1 = vld [vmem:[%s164_s28 + $0x40] sm:$0xff] (%p67_p3)  ;;  %199 = vst [vmem:[%s161_s29] sm:$0xff] (%p67_p3), %v198_v0 }
  0x17   : > { %v202_v2 = vld [vmem:[%s164_s28 + $0x80] sm:$0xff] (%p67_p3)  ;;  %201 = vst [vmem:[%s161_s29 + $0x8] sm:$0xff] (%p67_p3), %v200_v1 }
  0x18   : > { %203 = vst [vmem:[%s161_s29 + $0x10] sm:$0xff] (%p67_p3), %v202_v2  ;;  %v204_v3 = vld [vmem:[%s164_s28 + $0xc0] sm:$0xff] (%p67_p3) }
  0x19   : > { %205 = vst [vmem:[%s161_s29 + $0x18] sm:$0xff] %v204_v3 }
  0x1a PF: > { %p528_p8 = scmp.ge.s32.totalorder %s635_s16, 1  ;;  %p218_p9 = scmp.lt.s32.totalorder %s635_s16, 9 }
  0x1c   : > { %p219_p10 = pnand %p528_p8, %p218_p9 }
  0x1d   : > { %s225_s30 = sand.u32 (!%p219_p10), 1, %s619_s12   ;;  %v637_v4 = vmov (!%p219_p10), 0   ;;  %v596_v9 = vld [vmem:[%s737_s0] sm:$0xff] (!%p219_p10)   ;;  %vm314_vm0 = vcmask (!%p219_p10), 261120   ;;  %s531_s8 = sshll.u32 (!%p219_p10), %s627_s14, 1  ;;  %v279_v10 = vlaneseq (!%p219_p10) }
  0x1e   : > { %222 = sbr.rel (%p219_p10) target bundleno = 271 (0x10f), region = 66  ;;  %s529_s4 = sshll.u32 (!%p219_p10), %s225_s30, 5  ;;  %350 = vmatprep.mubr.bf16.mxu0 (!%p219_p10), %v637_v4 }
  0x1f   : > { %s227_s5 = scalar_lea.vmem (!%p219_p10), [#allocation2], %s529_s4  ;;  %p264_p11 = scmp.lt.s32.totalorder (!%p219_p10), %s531_s8, 15  ;;  %v280_v11 = vshrl.u32 (!%p219_p10), %v279_v10, 7 }
  0x20   : > { %v590_v5 = vld [vmem:[%s227_s5 + $0x4] ss:$8 sps:$4 sm:$0xff] (!%p219_p10)   ;;  %v592_v6 = vld [vmem:[%s227_s5] ss:$8 sps:$4 sm:$0xff] (!%p219_p10)   ;;  %v593_v7 = vld [vmem:[%s227_s5 + $0x14] ss:$8 sps:$4 sm:$0xff] (!%p219_p10)  }
  0x21   : > { %318 = vmatprep.subr.bf16.mxu0 (!%p219_p10), %v590_v5  ;;  %v595_v8 = vld [vmem:[%s227_s5 + $0x10] ss:$8 sps:$4 sm:$0xff] (!%p219_p10)   ;;  %v281_v12 = vsub.s32 (!%p219_p10), 0, %v280_v11  ;;  %v285_v14 = vsub.s32 (!%p219_p10), 1, %v280_v11  ;;  %s530_s12 = sshll.u32 (!%p219_p10), %s225_s30, 4 }
  0x22   : > { %319 = vmatpush1.bf16.msra.mxu0 (!%p219_p10), %v592_v6  ;;  %s255_s18 = scalar_lea.vmem (!%p219_p10), [#allocation3], %s530_s12 }
  0x23   : > { %320 = vmatprep.subr.bf16.mxu0 (!%p219_p10), %v593_v7 }
  0x25   : > { %s749_s8 = smov (!%p264_p11, %s531_s8), 15  ;;  %s548_s19 = sshll.u32 (%p693_p6), %s627_s14, 3 }
  0x26   : > { %321 = vmatpush1.bf16.msra.mxu0 %v595_v8  ;;  %s266_s11 = scalar_lea.vmem %s739_s2, %s749_s8  ;;  %s391_s24 = scalar_lea.vmem (%p693_p6), %s740_s3, %s548_s19 }
  0x27   : > { %v277_v13 = vld [vmem:[%s266_s11] sm:$0x3] }
  0x28   : > { %v282_v15 = vrot.slane %v277_v13, %v281_v12  ;;  %v286_v16 = vrot.slane %v277_v13, %v285_v14 }
  0x29   : > { %537 = vmatmul.mubr.msk.bf16.vlgmr.msra.gmra.mrb[0].mxu0 %vm314_vm0, %v596_v9 }
  0xfc   : > { %v352_v17 = vpop.f32.mrb[0].mxu0 }
  0xfd   : > { %v353_v18 = vadd.f32 %v352_v17, %v282_v15  ;;  %v354_v19 = vpop.f32.mrb[1].mxu0 }
  0xfe   : > { %v355_v20 = vadd.f32 %v354_v19, %v286_v16  ;;  %v356_v21 = vpop.f32.mrb[2].mxu0 }
  0xff   : > { %v361_v22 = vmax.f32 %v353_v18, 0.0  ;;  %v357_v23 = vadd.f32 %v356_v21, %v282_v15  ;;  %v358_v24 = vpop.f32.mrb[3].mxu0 }
 0x100   : > { %v362_v25 = vmax.f32 %v355_v20, 0.0  ;;  %v359_v26 = vadd.f32 %v358_v24, %v286_v16  ;;  %385 = sbr.rel (!%p693_p6) target bundleno = 271 (0x10f), region = 74 }
 0x101   : > { %v363_v27 = vmax.f32 %v357_v23, 0.0 }
 0x102   : > { %v546_v28 = vpack.c.bf16 %v362_v25, %v361_v22  ;;  %v364_v29 = vmax.f32 %v359_v26, 0.0 }
 0x104   : > { %377 = vst [vmem:[%s255_s18] sm:$0xff] %v546_v28  ;;  %v547_v30 = vpack.c.bf16 %v364_v29, %v363_v27 }
 0x106   : > { %378 = vst [vmem:[%s255_s18 + $0x8] sm:$0xff] %v547_v30 }
 0x10b   : > { %v421_v31 = vld [vmem:[%s255_s18] sm:$0xff] }
 0x10c   : > { %422 = vst [vmem:[%s391_s24] sm:$0xff] %v421_v31 }
 0x10d   : > { %v423_v32 = vld [vmem:[%s255_s18 + $0x8] sm:$0xff] }
 0x10e   : > { %424 = vst [vmem:[%s391_s24 + $0x40] sm:$0xff] %v423_v32 }
 0x10f PF: > { %s13_s16 = sadd.s32 1, %s635_s16   ;;  %s742_s12 = smov %s623_s13 }
 0x110   : > { %p10_p12 = scmp.ge.s32.totalorder %s13_s16, 10   ;;  %s743_s13 = smov %s698_s22 }
 0x111   : > { %s744_s14 = smov %s631_s15  ;;  %s745_s15 = smov %s747_s17 }
 0x112   :  { %12 = sbr.rel (!%p10_p12) target bundleno = 3 (0x3), region = 149 }

// kernel: encoder_forward.31
= control target key start
LH: loop header
LB: loop body
LE: loop exit
PB: predicated region body
PF: predicated region fallthrough
CT: control target
= control target key end

     0   :  { %vm24_vm0 = vcmask 254976   ;;  %s249_s0 = inlined_call_operand.vmem [shape: bf16[2,32], index: 0, kind: input, shape index: {}]   ;;  %s250_s1 = inlined_call_operand.vmem [shape: f32[1,32], index: 1, kind: input, shape index: {}]   ;;  %s251_s2 = inlined_call_operand.vmem [shape: f32[1,32], index: 2, kind: input, shape index: {}]   ;;  %s252_s3 = inlined_call_operand.vmem [shape: bf16[32,128], index: 3, kind: input, shape index: {}]   ;;  %s253_s4 = inlined_call_operand.vmem [shape: f32[1,128], index: 4, kind: input, shape index: {}]   ;;  %s254_s5 = inlined_call_operand.hbm [shape: f32[2,128], index: 5, kind: output, shape index: {}]  }
   0x1   :  { %v22_v0 = vld [vmem:[%s249_s0] sm:$0x1] }
   0x2   :  { %v23_v1 = vunpack.c.l.bf16 %v22_v0 }
   0x3   :  { %10 = vsyncpa [#allocation3], 0  ;;  %v158_v8 = vld [vmem:[%s252_s3] sm:$0xff]   ;;  %v186_v9 = vmov 0.0   ;;  %v159_v10 = vld [vmem:[%s252_s3 + $0x8] sm:$0xff]   ;;  %vm187_vm1 = vmmov 0  }
   0x4   :  { %v25_v2 = vsel %vm24_vm0, %v23_v1, 0.0  ;;  %147 = vmatprep.subr.bf16.mxu0 %v186_v9  ;;  %151 = vmatprep.mubr.msk.bf16.mxu0 %vm187_vm1, %v186_v9  ;;  %v138_v15 = vld [vmem:[%s250_s1] ss:$0 sm:$0xff]  ;;  %vm79_vm2 = vcmask 261120   ;;  %s188_s28 = smov [#allocation2]  }
   0x5   :  { %26 = vadd.xlane.f32.xlu0 %v25_v2  ;;  %148 = vmatpush3.bf16.msra.mxu0 %v158_v8  ;;  %v139_v17 = vld [vmem:[%s251_s2] ss:$0 sm:$0xff]  ;;  %s130_s29 = sshll.u32 %s188_s28, 4  ;;  %s131_s29 = int_to_ptr.vmem [resolvable:$true] %s130_s29 }
   0x6   :  { %149 = vmatprep.subr.bf16.mxu0 %v186_v9  ;;  %v140_v21 = vld [vmem:[%s253_s4] ss:$0 sm:$0xff]  ;;  %s162_s1 = scalar_lea.vmem %s131_s29, 32  ;;  %p167_p1 = scmp.lt.s32.totalorder %s131_s29, %s131_s29 }
   0x7   :  { %p163_p0 = scmp.ne.s32.totalorder %s131_s29, %s162_s1  ;;  %p168_p2 = scmp.lt.s32.totalorder %s162_s1, %s162_s1 }
   0x9   :  { %150 = vmatpush3.bf16.msra.mxu0 %v159_v10  ;;  %p169_p3 = por %p168_p2, %p167_p1 }
   0xb   :  { %p170_p4 = pnand %p169_p3, %p163_p0 }
  0x92   :  { %v27_v3 = vpop.xlane.xlu0 %26 }
  0x93   :  { %v29_v4 = vmul.f32 0.03125, %v27_v3 }
  0x95   :  { %v30_v5 = vsub.f32 %v23_v1, %v29_v4 }
  0x97   :  { %v31_v6 = vmul.f32 %v30_v5, %v30_v5 }
  0x99   :  { %v32_v7 = vsel %vm24_vm0, %v31_v6, 0.0 }
  0x9a   :  { %33 = vadd.xlane.f32.xlu0 %v32_v7 }
 0x127   :  { %v34_v11 = vpop.xlane.xlu0 %33 }
 0x128   :  { %v35_v12 = vmul.f32 0.03125, %v34_v11 }
 0x12a   :  { %v36_v13 = vadd.f32 1e-05, %v35_v12 }
 0x12c   :  { %160 = vrsqrt.f32 %v36_v13 }
 0x136   :  { %v161_v14 = vpop.eup %160 }
 0x137   :  { %v38_v16 = vmul.f32 %v161_v14, %v30_v5 }
 0x139   :  { %v46_v18 = vmul.f32 %v138_v15, %v38_v16 }
 0x13b   :  { %v54_v19 = vadd.f32 %v139_v17, %v46_v18 }
 0x13d   :  { %v55_v20 = vpack.c.bf16 %v54_v19, %v54_v19 }
 0x13f   :  { %152 = vmatmul.mubr.msk.bf16.vlgmr.msra.gmra.mrb[0].mxu0 %vm79_vm2, %v55_v20 }
 0x212   :  { %v117_v22 = vpop.f32.mrb[0].mxu0 }
 0x213   :  { %v118_v23 = vadd.f32 %v140_v21, %v117_v22  ;;  %v153_v24 = vpop.f32.mrb[1].mxu0 }
 0x214   :  { %v120_v25 = vpop.f32.mrb[2].mxu0 }
 0x215   :  { %123 = vst [vmem:[#allocation2] sm:$0x3] %v118_v23  ;;  %v154_v26 = vpop.f32.mrb[3].mxu0 }
 0x216   :  { %173 = shalt.err (!%p170_p4)
}
 0x217   :  { %s174_s4 = scalar_lea.hbm %s254_s5, 32 }
 0x218   :  { %p175_p5 = scmp.ne.s32.totalorder %s254_s5, %s174_s4  ;;  %p178_p6 = scmp.lt.u32.totalorder %s174_s4, %s254_s5 }
 0x21a   :  { %p180_p7 = pnand %p178_p6, %p175_p5 }
 0x21c   :  { %183 = shalt.err (!%p180_p7)
}
 0x21d   :  { %133 = dma.vmem_to_hbm [thread:$0]  %s131_s29, 32, %s254_s5, [#allocation3]  }
 0x21e   :  { %184 = dma.done.wait [#allocation3], 32  }
 0x21f   :  { %185 = vsyncadd [#allocation3], 4294967264 }
 0x220   :  { %137 = vsyncpa [#allocation3], 1 }

// kernel: encoder_forward.20
= control target key start
LH: loop header
LB: loop body
LE: loop exit
PB: predicated region body
PF: predicated region fallthrough
CT: control target
= control target key end

     0   :  { %vm1485_vm0 = vcmask 261120   ;;  %vm1539_vm1 = vcmask 257024   ;;  %s2498_s1 = inlined_call_operand.vmem [shape: bf16[2048,32], index: 1, kind: input, shape index: {}]   ;;  %s2499_s0 = inlined_call_operand.vmem [shape: bf16[16,2048], index: 0, kind: input, shape index: {}]   ;;  %s2500_s2 = inlined_call_operand.vmem [shape: f32[1,32], index: 2, kind: input, shape index: {}]   ;;  %s2501_s3 = inlined_call_operand.vmem [shape: bf16[16,32], index: 3, kind: input, shape index: {}]   ;;  %s2502_s4 = inlined_call_operand.vmem [shape: f32[1,32], index: 4, kind: input, shape index: {}]   ;;  %s2503_s5 = inlined_call_operand.vmem [shape: f32[1,32], index: 5, kind: input, shape index: {}]   ;;  %s2504_s6 = inlined_call_operand.vmem [shape: bf16[16,32], index: 6, kind: output, shape index: {}]  }
   0x1   :  { %v1877_v0 = vld [vmem:[%s2498_s1 + $0x40] sm:$0xff]   ;;  %v1881_v4 = vld [vmem:[%s2498_s1 + $0x48] sm:$0xff]   ;;  %v1885_v8 = vld [vmem:[%s2498_s1 + $0x50] sm:$0xff]  }
   0x2   :  { %v1878_v1 = vld [vmem:[%s2498_s1 + $0xc0] sm:$0xff]   ;;  %1701 = vmatprep.subr.bf16.mxu0 %v1877_v0  ;;  %v1882_v5 = vld [vmem:[%s2498_s1 + $0xc8] sm:$0xff]   ;;  %v1886_v9 = vld [vmem:[%s2498_s1 + $0xd0] sm:$0xff]  }
   0x3   :  { %v1879_v2 = vld [vmem:[%s2498_s1] sm:$0xff]   ;;  %1723 = vmatprep.subr.bf16.mxu1 %v1878_v1  ;;  %v1883_v6 = vld [vmem:[%s2498_s1 + $0x8] sm:$0xff]   ;;  %v1887_v10 = vld [vmem:[%s2498_s1 + $0x10] sm:$0xff]  }
   0x4   :  { %v1880_v3 = vld [vmem:[%s2498_s1 + $0x80] sm:$0xff]   ;;  %1702 = vmatpush3.bf16.msra.mxu0 %v1879_v2  ;;  %v1884_v7 = vld [vmem:[%s2498_s1 + $0x88] sm:$0xff]   ;;  %v1888_v11 = vld [vmem:[%s2498_s1 + $0x90] sm:$0xff]  }
   0x5   :  { %1724 = vmatpush3.bf16.msra.mxu1 %v1880_v3  ;;  %1703 = vmatprep.subr.bf16.mxu0 %v1881_v4  ;;  %v1889_v12 = vld [vmem:[%s2498_s1 + $0x58] sm:$0xff]   ;;  %v1893_v16 = vld [vmem:[%s2498_s1 + $0x60] sm:$0xff]   ;;  %v1897_v20 = vld [vmem:[%s2498_s1 + $0x68] sm:$0xff]  }
   0x6   :  { %1725 = vmatprep.subr.bf16.mxu1 %v1882_v5  ;;  %v1890_v13 = vld [vmem:[%s2498_s1 + $0xd8] sm:$0xff]   ;;  %v1894_v17 = vld [vmem:[%s2498_s1 + $0xe0] sm:$0xff]   ;;  %v1898_v21 = vld [vmem:[%s2498_s1 + $0xe8] sm:$0xff]  }
   0x7   :  { %v1891_v14 = vld [vmem:[%s2498_s1 + $0x18] sm:$0xff]   ;;  %v1895_v18 = vld [vmem:[%s2498_s1 + $0x20] sm:$0xff]   ;;  %v1899_v22 = vld [vmem:[%s2498_s1 + $0x28] sm:$0xff]  }
   0x8   :  { %1704 = vmatpush3.bf16.msra.mxu0 %v1883_v6  ;;  %v1892_v15 = vld [vmem:[%s2498_s1 + $0x98] sm:$0xff]   ;;  %v1896_v19 = vld [vmem:[%s2498_s1 + $0xa0] sm:$0xff]   ;;  %v1900_v23 = vld [vmem:[%s2498_s1 + $0xa8] sm:$0xff]  }
   0x9   :  { %1726 = vmatpush3.bf16.msra.mxu1 %v1884_v7  ;;  %1705 = vmatprep.subr.bf16.mxu0 %v1885_v8  ;;  %v1901_v24 = vld [vmem:[%s2498_s1 + $0x70] sm:$0xff]   ;;  %v1905_v28 = vld [vmem:[%s2498_s1 + $0x78] sm:$0xff]   ;;  %v24_v32 = vld [vmem:[%s2499_s0] sm:$0xff] }
   0xa   :  { %1727 = vmatprep.subr.bf16.mxu1 %v1886_v9  ;;  %v1902_v25 = vld [vmem:[%s2498_s1 + $0xf0] sm:$0xff]   ;;  %v1906_v29 = vld [vmem:[%s2498_s1 + $0xf8] sm:$0xff]   ;;  %v32_v33 = vld [vmem:[%s2499_s0 + $0x40] sm:$0xff] }
   0xb   :  { %v1903_v26 = vld [vmem:[%s2498_s1 + $0x30] sm:$0xff]   ;;  %v1907_v30 = vld [vmem:[%s2498_s1 + $0x38] sm:$0xff]   ;;  %v25_v34 = vld [vmem:[%s2499_s0 + $0x8] sm:$0xff]  ;;  %v1547_v35 = vcombine.low %v24_v32, %v32_v33  ;;  %v1548_v36 = vcombine.high %v24_v32, %v32_v33 }
   0xc   :  { %1706 = vmatpush3.bf16.msra.mxu0 %v1887_v10  ;;  %v1904_v27 = vld [vmem:[%s2498_s1 + $0xb0] sm:$0xff]   ;;  %v1908_v31 = vld [vmem:[%s2498_s1 + $0xb8] sm:$0xff]   ;;  %v33_v37 = vld [vmem:[%s2499_s0 + $0x48] sm:$0xff] }
   0xd   :  { %1728 = vmatpush3.bf16.msra.mxu1 %v1888_v11  ;;  %1707 = vmatprep.subr.bf16.mxu0 %v1889_v12  ;;  %v1549_v38 = vcombine.low %v25_v34, %v33_v37  ;;  %v1550_v39 = vcombine.high %v25_v34, %v33_v37  ;;  %v1909_v40 = vld [vmem:[%s2498_s1 + $0x140] sm:$0xff]   ;;  %v1913_v44 = vld [vmem:[%s2498_s1 + $0x148] sm:$0xff]   ;;  %v1917_v48 = vld [vmem:[%s2498_s1 + $0x150] sm:$0xff]  }
   0xe   :  { %1729 = vmatprep.subr.bf16.mxu1 %v1890_v13  ;;  %1183 = vmatprep.mubr.bf16.mxu0 %v1548_v36  ;;  %v1910_v41 = vld [vmem:[%s2498_s1 + $0x1c0] sm:$0xff]   ;;  %v1914_v45 = vld [vmem:[%s2498_s1 + $0x1c8] sm:$0xff]   ;;  %v1918_v49 = vld [vmem:[%s2498_s1 + $0x1d0] sm:$0xff]  }
   0xf   :  { %1224 = vmatprep.mubr.bf16.mxu1 %v1550_v39  ;;  %v1911_v42 = vld [vmem:[%s2498_s1 + $0x100] sm:$0xff]   ;;  %v1915_v46 = vld [vmem:[%s2498_s1 + $0x108] sm:$0xff]   ;;  %v1919_v50 = vld [vmem:[%s2498_s1 + $0x110] sm:$0xff]  }
  0x10   :  { %1708 = vmatpush3.bf16.msra.mxu0 %v1891_v14  ;;  %v1912_v43 = vld [vmem:[%s2498_s1 + $0x180] sm:$0xff]   ;;  %v1916_v47 = vld [vmem:[%s2498_s1 + $0x188] sm:$0xff]   ;;  %v1920_v51 = vld [vmem:[%s2498_s1 + $0x190] sm:$0xff]  }
  0x11   :  { %1730 = vmatpush3.bf16.msra.mxu1 %v1892_v15  ;;  %1709 = vmatprep.subr.bf16.mxu0 %v1893_v16  ;;  %v1921_v52 = vld [vmem:[%s2498_s1 + $0x158] sm:$0xff]   ;;  %v1925_v56 = vld [vmem:[%s2498_s1 + $0x160] sm:$0xff]   ;;  %v1929_v60 = vld [vmem:[%s2498_s1 + $0x168] sm:$0xff]  }
  0x12   :  { %1731 = vmatprep.subr.bf16.mxu1 %v1894_v17  ;;  %v1922_v53 = vld [vmem:[%s2498_s1 + $0x1d8] sm:$0xff]   ;;  %v1926_v57 = vld [vmem:[%s2498_s1 + $0x1e0] sm:$0xff]   ;;  %v1930_v61 = vld [vmem:[%s2498_s1 + $0x1e8] sm:$0xff]  }
  0x13   :  { %v1923_v54 = vld [vmem:[%s2498_s1 + $0x118] sm:$0xff]   ;;  %v1927_v58 = vld [vmem:[%s2498_s1 + $0x120] sm:$0xff]   ;;  %v1931_v62 = vld [vmem:[%s2498_s1 + $0x128] sm:$0xff]  }
  0x14   :  { %1710 = vmatpush3.bf16.msra.mxu0 %v1895_v18  ;;  %v1924_v55 = vld [vmem:[%s2498_s1 + $0x198] sm:$0xff]   ;;  %v1928_v59 = vld [vmem:[%s2498_s1 + $0x1a0] sm:$0xff]   ;;  %v1932_v63 = vld [vmem:[%s2498_s1 + $0x1a8] sm:$0xff]  }
  0x15   :  { %1732 = vmatpush3.bf16.msra.mxu1 %v1896_v19  ;;  %1711 = vmatprep.subr.bf16.mxu0 %v1897_v20  ;;  %v1933_v0 = vld [vmem:[%s2498_s1 + $0x170] sm:$0xff]   ;;  %v1937_v4 = vld [vmem:[%s2498_s1 + $0x178] sm:$0xff]   ;;  %v1941_v16 = vld [vmem:[%s2498_s1 + $0x240] sm:$0xff]  }
  0x16   :  { %1733 = vmatprep.subr.bf16.mxu1 %v1898_v21  ;;  %v1934_v1 = vld [vmem:[%s2498_s1 + $0x1f0] sm:$0xff]   ;;  %v1938_v5 = vld [vmem:[%s2498_s1 + $0x1f8] sm:$0xff]   ;;  %v1942_v17 = vld [vmem:[%s2498_s1 + $0x2c0] sm:$0xff]  }
  0x17   :  { %v1935_v2 = vld [vmem:[%s2498_s1 + $0x130] sm:$0xff]   ;;  %v1939_v6 = vld [vmem:[%s2498_s1 + $0x138] sm:$0xff]   ;;  %v1943_v18 = vld [vmem:[%s2498_s1 + $0x200] sm:$0xff]  }
  0x18   :  { %1712 = vmatpush3.bf16.msra.mxu0 %v1899_v22  ;;  %v1936_v3 = vld [vmem:[%s2498_s1 + $0x1b0] sm:$0xff]   ;;  %v1940_v7 = vld [vmem:[%s2498_s1 + $0x1b8] sm:$0xff]   ;;  %v1944_v19 = vld [vmem:[%s2498_s1 + $0x280] sm:$0xff]  }
  0x19   :  { %1734 = vmatpush3.bf16.msra.mxu1 %v1900_v23  ;;  %1713 = vmatprep.subr.bf16.mxu0 %v1901_v24  ;;  %v26_v8 = vld [vmem:[%s2499_s0 + $0x10] sm:$0xff]  ;;  %v27_v12 = vld [vmem:[%s2499_s0 + $0x18] sm:$0xff]  ;;  %v1945_v20 = vld [vmem:[%s2498_s1 + $0x248] sm:$0xff]  }
  0x1a   :  { %1735 = vmatprep.subr.bf16.mxu1 %v1902_v25  ;;  %v34_v9 = vld [vmem:[%s2499_s0 + $0x50] sm:$0xff]  ;;  %v35_v13 = vld [vmem:[%s2499_s0 + $0x58] sm:$0xff]  ;;  %v1946_v21 = vld [vmem:[%s2498_s1 + $0x2c8] sm:$0xff]  }
  0x1b   :  { %v1551_v10 = vcombine.low %v26_v8, %v34_v9  ;;  %v1552_v11 = vcombine.high %v26_v8, %v34_v9  ;;  %v1553_v14 = vcombine.low %v27_v12, %v35_v13  ;;  %v1554_v15 = vcombine.high %v27_v12, %v35_v13  ;;  %v1947_v22 = vld [vmem:[%s2498_s1 + $0x208] sm:$0xff]   ;;  %v1949_v24 = vld [vmem:[%s2498_s1 + $0x250] sm:$0xff]   ;;  %v1957_v32 = vld [vmem:[%s2498_s1 + $0x260] sm:$0xff]  }
  0x1c   :  { %1714 = vmatpush3.bf16.msra.mxu0 %v1903_v26  ;;  %v1948_v23 = vld [vmem:[%s2498_s1 + $0x288] sm:$0xff]   ;;  %v1950_v25 = vld [vmem:[%s2498_s1 + $0x2d0] sm:$0xff]   ;;  %v1958_v33 = vld [vmem:[%s2498_s1 + $0x2e0] sm:$0xff]  }
  0x1d   :  { %1736 = vmatpush3.bf16.msra.mxu1 %v1904_v27  ;;  %1715 = vmatprep.subr.bf16.mxu0 %v1905_v28  ;;  %v1951_v26 = vld [vmem:[%s2498_s1 + $0x210] sm:$0xff]   ;;  %v1953_v28 = vld [vmem:[%s2498_s1 + $0x258] sm:$0xff]   ;;  %v1959_v34 = vld [vmem:[%s2498_s1 + $0x220] sm:$0xff]  }
  0x1e   :  { %1737 = vmatprep.subr.bf16.mxu1 %v1906_v29  ;;  %v1952_v27 = vld [vmem:[%s2498_s1 + $0x290] sm:$0xff]   ;;  %v1954_v29 = vld [vmem:[%s2498_s1 + $0x2d8] sm:$0xff]   ;;  %v1961_v36 = vld [vmem:[%s2498_s1 + $0x268] sm:$0xff]  }
  0x1f   :  { %v1962_v37 = vld [vmem:[%s2498_s1 + $0x2e8] sm:$0xff]   ;;  %v1989_v8 = vld [vmem:[%s2498_s1 + $0x360] sm:$0xff]  }
  0x20   :  { %1716 = vmatpush3.bf16.msra.mxu0 %v1907_v30  ;;  %v1955_v30 = vld [vmem:[%s2498_s1 + $0x218] sm:$0xff]   ;;  %v1964_v39 = vld [vmem:[%s2498_s1 + $0x2a8] sm:$0xff]   ;;  %v1990_v9 = vld [vmem:[%s2498_s1 + $0x3e0] sm:$0xff]  }
  0x21   :  { %1738 = vmatpush3.bf16.msra.mxu1 %v1908_v31  ;;  %1745 = vmatprep.subr.bf16.mxu0 %v1909_v40  ;;  %v1956_v31 = vld [vmem:[%s2498_s1 + $0x298] sm:$0xff]   ;;  %v1965_v40 = vld [vmem:[%s2498_s1 + $0x270] sm:$0xff]   ;;  %v1993_v12 = vld [vmem:[%s2498_s1 + $0x368] sm:$0xff]  }
  0x22   :  { %1767 = vmatprep.subr.bf16.mxu1 %v1910_v41  ;;  %v1966_v41 = vld [vmem:[%s2498_s1 + $0x2f0] sm:$0xff]   ;;  %v1994_v13 = vld [vmem:[%s2498_s1 + $0x3e8] sm:$0xff]  }
  0x23   :  { %1184 = vmatmul.mubr.bf16.vlgmr.msra.gmra.mrb[0].mxu0 %v1547_v35  ;;  %v1960_v35 = vld [vmem:[%s2498_s1 + $0x2a0] sm:$0xff]  }
  0x24   :  { %1225 = vmatmul.mubr.bf16.vlgmr.msra.gmra.mrb[0].mxu1 %v1549_v38  ;;  %1746 = vmatpush3.bf16.msra.mxu0 %v1911_v42  ;;  %v1963_v38 = vld [vmem:[%s2498_s1 + $0x228] sm:$0xff]   ;;  %v1967_v42 = vld [vmem:[%s2498_s1 + $0x230] sm:$0xff]  }
  0x25   :  { %1768 = vmatpush3.bf16.msra.mxu1 %v1912_v43  ;;  %1747 = vmatprep.subr.bf16.mxu0 %v1913_v44  ;;  %v1968_v43 = vld [vmem:[%s2498_s1 + $0x2b0] sm:$0xff]   ;;  %v1969_v44 = vld [vmem:[%s2498_s1 + $0x278] sm:$0xff]  }
  0x26   :  { %1769 = vmatprep.subr.bf16.mxu1 %v1914_v45  ;;  %1265 = vmatprep.mubr.bf16.mxu0 %v1552_v11  ;;  %v1970_v45 = vld [vmem:[%s2498_s1 + $0x2f8] sm:$0xff]   ;;  %v1992_v11 = vld [vmem:[%s2498_s1 + $0x3a0] sm:$0xff]  }
  0x27   :  { %1306 = vmatprep.mubr.bf16.mxu1 %v1554_v15  ;;  %v1996_v15 = vld [vmem:[%s2498_s1 + $0x3a8] sm:$0xff]  }
  0x28   :  { %1748 = vmatpush3.bf16.msra.mxu0 %v1915_v46  ;;  %v1971_v46 = vld [vmem:[%s2498_s1 + $0x238] sm:$0xff]  }
  0x29   :  { %1770 = vmatpush3.bf16.msra.mxu1 %v1916_v47  ;;  %1749 = vmatprep.subr.bf16.mxu0 %v1917_v48  ;;  %v1972_v47 = vld [vmem:[%s2498_s1 + $0x2b8] sm:$0xff]   ;;  %v28_v48 = vld [vmem:[%s2499_s0 + $0x20] sm:$0xff] }
  0x2a   :  { %1771 = vmatprep.subr.bf16.mxu1 %v1918_v49  ;;  %v36_v49 = vld [vmem:[%s2499_s0 + $0x60] sm:$0xff] }
  0x2c   :  { %1750 = vmatpush3.bf16.msra.mxu0 %v1919_v50  ;;  %v29_v50 = vld [vmem:[%s2499_s0 + $0x28] sm:$0xff] }
  0x2d   :  { %1772 = vmatpush3.bf16.msra.mxu1 %v1920_v51  ;;  %1751 = vmatprep.subr.bf16.mxu0 %v1921_v52  ;;  %v37_v51 = vld [vmem:[%s2499_s0 + $0x68] sm:$0xff]  ;;  %v1555_v52 = vcombine.low %v28_v48, %v36_v49 }
  0x2e   :  { %1773 = vmatprep.subr.bf16.mxu1 %v1922_v53  ;;  %v1556_v53 = vcombine.high %v28_v48, %v36_v49 }
  0x30   :  { %1752 = vmatpush3.bf16.msra.mxu0 %v1923_v54  ;;  %v1557_v54 = vcombine.low %v29_v50, %v37_v51 }
  0x31   :  { %1774 = vmatpush3.bf16.msra.mxu1 %v1924_v55  ;;  %1753 = vmatprep.subr.bf16.mxu0 %v1925_v56  ;;  %v1558_v55 = vcombine.high %v29_v50, %v37_v51  ;;  %v1973_v56 = vld [vmem:[%s2498_s1 + $0x340] sm:$0xff]  }
  0x32   :  { %1775 = vmatprep.subr.bf16.mxu1 %v1926_v57  ;;  %v1974_v57 = vld [vmem:[%s2498_s1 + $0x3c0] sm:$0xff]  }
  0x34   :  { %1754 = vmatpush3.bf16.msra.mxu0 %v1927_v58  ;;  %v1975_v58 = vld [vmem:[%s2498_s1 + $0x300] sm:$0xff]  }
  0x35   :  { %1776 = vmatpush3.bf16.msra.mxu1 %v1928_v59  ;;  %1755 = vmatprep.subr.bf16.mxu0 %v1929_v60  ;;  %v1976_v59 = vld [vmem:[%s2498_s1 + $0x380] sm:$0xff]   ;;  %v1977_v60 = vld [vmem:[%s2498_s1 + $0x348] sm:$0xff]  }
  0x36   :  { %1777 = vmatprep.subr.bf16.mxu1 %v1930_v61  ;;  %v1978_v61 = vld [vmem:[%s2498_s1 + $0x3c8] sm:$0xff]  }
  0x38   :  { %1756 = vmatpush3.bf16.msra.mxu0 %v1931_v62  ;;  %v1979_v62 = vld [vmem:[%s2498_s1 + $0x308] sm:$0xff]  }
  0x39   :  { %1778 = vmatpush3.bf16.msra.mxu1 %v1932_v63  ;;  %1757 = vmatprep.subr.bf16.mxu0 %v1933_v0  ;;  %v1980_v63 = vld [vmem:[%s2498_s1 + $0x388] sm:$0xff]   ;;  %v1981_v0 = vld [vmem:[%s2498_s1 + $0x350] sm:$0xff]  }
  0x3a   :  { %1779 = vmatprep.subr.bf16.mxu1 %v1934_v1  ;;  %v1982_v1 = vld [vmem:[%s2498_s1 + $0x3d0] sm:$0xff]  }
  0x3c   :  { %1758 = vmatpush3.bf16.msra.mxu0 %v1935_v2  ;;  %v1983_v2 = vld [vmem:[%s2498_s1 + $0x310] sm:$0xff]  }
  0x3d   :  { %1780 = vmatpush3.bf16.msra.mxu1 %v1936_v3  ;;  %1759 = vmatprep.subr.bf16.mxu0 %v1937_v4  ;;  %v1984_v3 = vld [vmem:[%s2498_s1 + $0x390] sm:$0xff]   ;;  %v1985_v4 = vld [vmem:[%s2498_s1 + $0x358] sm:$0xff]  }
  0x3e   :  { %1781 = vmatprep.subr.bf16.mxu1 %v1938_v5  ;;  %v1986_v5 = vld [vmem:[%s2498_s1 + $0x3d8] sm:$0xff]  }
  0x40   :  { %1760 = vmatpush3.bf16.msra.mxu0 %v1939_v6  ;;  %v1987_v6 = vld [vmem:[%s2498_s1 + $0x318] sm:$0xff]  }
  0x41   :  { %1782 = vmatpush3.bf16.msra.mxu1 %v1940_v7  ;;  %1789 = vmatprep.subr.bf16.mxu0 %v1941_v16  ;;  %v1988_v7 = vld [vmem:[%s2498_s1 + $0x398] sm:$0xff]   ;;  %v1997_v16 = vld [vmem:[%s2498_s1 + $0x370] sm:$0xff]  }
  0x42   :  { %1811 = vmatprep.subr.bf16.mxu1 %v1942_v17  ;;  %v1998_v17 = vld [vmem:[%s2498_s1 + $0x3f0] sm:$0xff]  }
  0x43   :  { %1266 = vmatmul.mubr.bf16.vlgmr.msra.gmra.mrb[4].mxu0 %v1551_v10  ;;  %v1991_v10 = vld [vmem:[%s2498_s1 + $0x320] sm:$0xff]  }
  0x44   :  { %1307 = vmatmul.mubr.bf16.vlgmr.msra.gmra.mrb[4].mxu1 %v1553_v14  ;;  %1790 = vmatpush3.bf16.msra.mxu0 %v1943_v18  ;;  %v1995_v14 = vld [vmem:[%s2498_s1 + $0x328] sm:$0xff]   ;;  %v1999_v18 = vld [vmem:[%s2498_s1 + $0x330] sm:$0xff]  }
  0x45   :  { %1812 = vmatpush3.bf16.msra.mxu1 %v1944_v19  ;;  %1791 = vmatprep.subr.bf16.mxu0 %v1945_v20  ;;  %v2000_v19 = vld [vmem:[%s2498_s1 + $0x3b0] sm:$0xff]   ;;  %v2001_v20 = vld [vmem:[%s2498_s1 + $0x378] sm:$0xff]  }
  0x46   :  { %1813 = vmatprep.subr.bf16.mxu1 %v1946_v21  ;;  %1347 = vmatprep.mubr.bf16.mxu0 %v1556_v53  ;;  %v2002_v21 = vld [vmem:[%s2498_s1 + $0x3f8] sm:$0xff]  }
  0x47   :  { %1388 = vmatprep.mubr.bf16.mxu1 %v1558_v55 }
  0x48   :  { %1792 = vmatpush3.bf16.msra.mxu0 %v1947_v22  ;;  %v2003_v22 = vld [vmem:[%s2498_s1 + $0x338] sm:$0xff]  }
  0x49   :  { %1814 = vmatpush3.bf16.msra.mxu1 %v1948_v23  ;;  %1793 = vmatprep.subr.bf16.mxu0 %v1949_v24  ;;  %v2004_v23 = vld [vmem:[%s2498_s1 + $0x3b8] sm:$0xff]   ;;  %v30_v24 = vld [vmem:[%s2499_s0 + $0x30] sm:$0xff] }
  0x4a   :  { %1815 = vmatprep.subr.bf16.mxu1 %v1950_v25  ;;  %v38_v25 = vld [vmem:[%s2499_s0 + $0x70] sm:$0xff] }
  0x4c   :  { %1794 = vmatpush3.bf16.msra.mxu0 %v1951_v26  ;;  %v31_v26 = vld [vmem:[%s2499_s0 + $0x38] sm:$0xff] }
  0x4d   :  { %1816 = vmatpush3.bf16.msra.mxu1 %v1952_v27  ;;  %1795 = vmatprep.subr.bf16.mxu0 %v1953_v28  ;;  %v1559_v27 = vcombine.low %v30_v24, %v38_v25  ;;  %v1560_v28 = vcombine.high %v30_v24, %v38_v25 }
  0x4e   :  { %1817 = vmatprep.subr.bf16.mxu1 %v1954_v29  ;;  %v39_v29 = vld [vmem:[%s2499_s0 + $0x78] sm:$0xff] }
  0x50   :  { %1796 = vmatpush3.bf16.msra.mxu0 %v1955_v30  ;;  %v1561_v30 = vcombine.low %v31_v26, %v39_v29 }
  0x51   :  { %1818 = vmatpush3.bf16.msra.mxu1 %v1956_v31  ;;  %1797 = vmatprep.subr.bf16.mxu0 %v1957_v32  ;;  %v1562_v31 = vcombine.high %v31_v26, %v39_v29 }
  0x52   :  { %1819 = vmatprep.subr.bf16.mxu1 %v1958_v33 }
  0x54   :  { %1798 = vmatpush3.bf16.msra.mxu0 %v1959_v34  ;;  %v1546_v34 = vld [vmem:[%s2500_s2] ss:$0 sm:$0xff] }
  0x55   :  { %1820 = vmatpush3.bf16.msra.mxu1 %v1960_v35  ;;  %1799 = vmatprep.subr.bf16.mxu0 %v1961_v36 }
  0x56   :  { %1821 = vmatprep.subr.bf16.mxu1 %v1962_v37 }
  0x58   :  { %1800 = vmatpush3.bf16.msra.mxu0 %v1963_v38 }
  0x59   :  { %1822 = vmatpush3.bf16.msra.mxu1 %v1964_v39  ;;  %1801 = vmatprep.subr.bf16.mxu0 %v1965_v40 }
  0x5a   :  { %1823 = vmatprep.subr.bf16.mxu1 %v1966_v41 }
  0x5c   :  { %1802 = vmatpush3.bf16.msra.mxu0 %v1967_v42 }
  0x5d   :  { %1824 = vmatpush3.bf16.msra.mxu1 %v1968_v43  ;;  %1803 = vmatprep.subr.bf16.mxu0 %v1969_v44 }
  0x5e   :  { %1825 = vmatprep.subr.bf16.mxu1 %v1970_v45 }
  0x60   :  { %1804 = vmatpush3.bf16.msra.mxu0 %v1971_v46 }
  0x61   :  { %1826 = vmatpush3.bf16.msra.mxu1 %v1972_v47  ;;  %1833 = vmatprep.subr.bf16.mxu0 %v1973_v56 }
  0x62   :  { %1855 = vmatprep.subr.bf16.mxu1 %v1974_v57 }
  0x63   :  { %1348 = vmatmul.mubr.bf16.vlgmr.msra.gmra.mrb[8].mxu0 %v1555_v52 }
  0x64   :  { %1389 = vmatmul.mubr.bf16.vlgmr.msra.gmra.mrb[8].mxu1 %v1557_v54  ;;  %1834 = vmatpush3.bf16.msra.mxu0 %v1975_v58 }
  0x65   :  { %1856 = vmatpush3.bf16.msra.mxu1 %v1976_v59  ;;  %1835 = vmatprep.subr.bf16.mxu0 %v1977_v60 }
  0x66   :  { %1857 = vmatprep.subr.bf16.mxu1 %v1978_v61  ;;  %1429 = vmatprep.mubr.bf16.mxu0 %v1560_v28 }
  0x67   :  { %1470 = vmatprep.mubr.bf16.mxu1 %v1562_v31 }
  0x68   :  { %1836 = vmatpush3.bf16.msra.mxu0 %v1979_v62 }
  0x69   :  { %1858 = vmatpush3.bf16.msra.mxu1 %v1980_v63  ;;  %1837 = vmatprep.subr.bf16.mxu0 %v1981_v0 }
  0x6a   :  { %1859 = vmatprep.subr.bf16.mxu1 %v1982_v1 }
  0x6c   :  { %1838 = vmatpush3.bf16.msra.mxu0 %v1983_v2 }
  0x6d   :  { %1860 = vmatpush3.bf16.msra.mxu1 %v1984_v3  ;;  %1839 = vmatprep.subr.bf16.mxu0 %v1985_v4 }
  0x6e   :  { %1861 = vmatprep.subr.bf16.mxu1 %v1986_v5 }
  0x70   :  { %1840 = vmatpush3.bf16.msra.mxu0 %v1987_v6 }
  0x71   :  { %1862 = vmatpush3.bf16.msra.mxu1 %v1988_v7  ;;  %1841 = vmatprep.subr.bf16.mxu0 %v1989_v8 }
  0x72   :  { %1863 = vmatprep.subr.bf16.mxu1 %v1990_v9 }
  0x74   :  { %1842 = vmatpush3.bf16.msra.mxu0 %v1991_v10 }
  0x75   :  { %1864 = vmatpush3.bf16.msra.mxu1 %v1992_v11  ;;  %1843 = vmatprep.subr.bf16.mxu0 %v1993_v12 }
  0x76   :  { %1865 = vmatprep.subr.bf16.mxu1 %v1994_v13 }
  0x78   :  { %1844 = vmatpush3.bf16.msra.mxu0 %v1995_v14 }
  0x79   :  { %1866 = vmatpush3.bf16.msra.mxu1 %v1996_v15  ;;  %1845 = vmatprep.subr.bf16.mxu0 %v1997_v16 }
  0x7a   :  { %1867 = vmatprep.subr.bf16.mxu1 %v1998_v17 }
  0x7c   :  { %1846 = vmatpush3.bf16.msra.mxu0 %v1999_v18 }
  0x7d   :  { %1868 = vmatpush3.bf16.msra.mxu1 %v2000_v19  ;;  %1847 = vmatprep.subr.bf16.mxu0 %v2001_v20  ;;  %v1698_v20 = vld [vmem:[%s2501_s3] sm:$0xff]  }
  0x7e   :  { %1869 = vmatprep.subr.bf16.mxu1 %v2002_v21 }
  0x80   :  { %1848 = vmatpush3.bf16.msra.mxu0 %v2003_v22 }
  0x81   :  { %1870 = vmatpush3.bf16.msra.mxu1 %v2004_v23 }
  0x83   :  { %1430 = vmatmul.mubr.bf16.vlgmr.msra.gmra.mrb[12].mxu0 %v1559_v27 }
  0x84   :  { %1471 = vmatmul.mubr.bf16.vlgmr.msra.gmra.mrb[12].mxu1 %v1561_v30  ;;  %v1699_v30 = vunpack.c.l.bf16 %v1698_v20 }
  0xf6   :  { %v1717_v32 = vpop.f32.mrb[0].mxu0 }
  0xf7   :  { %v1739_v33 = vpop.f32.mrb[0].mxu1  ;;  %v1718_v35 = vpop.f32.mrb[1].mxu0 }
  0xf8   :  { %v1719_v36 = vadd.f32 %v1718_v35, %v1717_v32  ;;  %v1740_v37 = vpop.f32.mrb[1].mxu1  ;;  %v1720_v38 = vpop.f32.mrb[2].mxu0 }
  0xf9   :  { %v1741_v39 = vadd.f32 %v1740_v37, %v1739_v33  ;;  %v1742_v40 = vpop.f32.mrb[2].mxu1  ;;  %v1721_v41 = vpop.f32.mrb[3].mxu0 }
  0xfa   :  { %v1186_v42 = vadd.f32 %v1719_v36, %v1546_v34  ;;  %v1722_v43 = vadd.f32 %v1721_v41, %v1720_v38  ;;  %v1743_v44 = vpop.f32.mrb[3].mxu1 }
  0xfb   :  { %v1744_v45 = vadd.f32 %v1743_v44, %v1742_v40 }
  0xfc   :  { %v1227_v46 = vadd.f32 %v1741_v39, %v1186_v42  ;;  %v1189_v47 = vadd.f32 %v1722_v43, %v1546_v34  ;;  %v1700_v34 = vunpack.c.h.bf16 %v1698_v20 }
  0xfe   :  { %v1230_v48 = vadd.f32 %v1744_v45, %v1189_v47 }
 0x116   :  { %v1761_v49 = vpop.f32.mrb[4].mxu0 }
 0x117   :  { %v1783_v50 = vpop.f32.mrb[4].mxu1  ;;  %v1762_v51 = vpop.f32.mrb[5].mxu0 }
 0x118   :  { %v1763_v52 = vadd.f32 %v1762_v51, %v1761_v49  ;;  %v1784_v53 = vpop.f32.mrb[5].mxu1  ;;  %v1764_v54 = vpop.f32.mrb[6].mxu0 }
 0x119   :  { %v1785_v55 = vadd.f32 %v1784_v53, %v1783_v50  ;;  %v1786_v56 = vpop.f32.mrb[6].mxu1  ;;  %v1765_v57 = vpop.f32.mrb[7].mxu0 }
 0x11a   :  { %v1268_v58 = vadd.f32 %v1763_v52, %v1227_v46  ;;  %v1766_v59 = vadd.f32 %v1765_v57, %v1764_v54  ;;  %v1787_v60 = vpop.f32.mrb[7].mxu1  ;;  %v1691_v57 = vld [vmem:[%s2502_s4] ss:$0 sm:$0xff] }
 0x11b   :  { %v1788_v61 = vadd.f32 %v1787_v60, %v1786_v56 }
 0x11c   :  { %v1309_v62 = vadd.f32 %v1785_v55, %v1268_v58  ;;  %v1271_v63 = vadd.f32 %v1766_v59, %v1230_v48  ;;  %v1692_v59 = vld [vmem:[%s2503_s5] ss:$0 sm:$0xff] }
 0x11e   :  { %v1312_v0 = vadd.f32 %v1788_v61, %v1271_v63 }
 0x136   :  { %v1805_v1 = vpop.f32.mrb[8].mxu0 }
 0x137   :  { %v1827_v2 = vpop.f32.mrb[8].mxu1  ;;  %v1806_v3 = vpop.f32.mrb[9].mxu0 }
 0x138   :  { %v1828_v4 = vpop.f32.mrb[9].mxu1  ;;  %v1807_v5 = vadd.f32 %v1806_v3, %v1805_v1  ;;  %v1808_v7 = vpop.f32.mrb[10].mxu0 }
 0x139   :  { %v1829_v6 = vadd.f32 %v1828_v4, %v1827_v2  ;;  %v1830_v8 = vpop.f32.mrb[10].mxu1  ;;  %v1809_v9 = vpop.f32.mrb[11].mxu0 }
 0x13a   :  { %v1831_v10 = vpop.f32.mrb[11].mxu1  ;;  %v1350_v11 = vadd.f32 %v1807_v5, %v1309_v62  ;;  %v1810_v12 = vadd.f32 %v1809_v9, %v1808_v7 }
 0x13b   :  { %v1832_v13 = vadd.f32 %v1831_v10, %v1830_v8 }
 0x13c   :  { %v1391_v14 = vadd.f32 %v1829_v6, %v1350_v11  ;;  %v1353_v15 = vadd.f32 %v1810_v12, %v1312_v0 }
 0x13e   :  { %v1394_v16 = vadd.f32 %v1832_v13, %v1353_v15 }
 0x156   :  { %v1849_v17 = vpop.f32.mrb[12].mxu0 }
 0x157   :  { %v1871_v18 = vpop.f32.mrb[12].mxu1  ;;  %v1850_v19 = vpop.f32.mrb[13].mxu0 }
 0x158   :  { %v1851_v21 = vadd.f32 %v1850_v19, %v1849_v17  ;;  %v1872_v22 = vpop.f32.mrb[13].mxu1  ;;  %v1852_v23 = vpop.f32.mrb[14].mxu0 }
 0x159   :  { %v1873_v24 = vadd.f32 %v1872_v22, %v1871_v18  ;;  %v1874_v25 = vpop.f32.mrb[14].mxu1  ;;  %v1853_v26 = vpop.f32.mrb[15].mxu0 }
 0x15a   :  { %v1432_v27 = vadd.f32 %v1851_v21, %v1391_v14  ;;  %v1854_v28 = vadd.f32 %v1853_v26, %v1852_v23  ;;  %v1875_v29 = vpop.f32.mrb[15].mxu1 }
 0x15b   :  { %v1876_v31 = vadd.f32 %v1875_v29, %v1874_v25 }
 0x15c   :  { %v1473_v32 = vadd.f32 %v1873_v24, %v1432_v27  ;;  %v1435_v33 = vadd.f32 %v1854_v28, %v1394_v16 }
 0x15e   :  { %v1476_v35 = vadd.f32 %v1876_v31, %v1435_v33  ;;  %v1483_v36 = vadd.f32 %v1699_v30, %v1473_v32 }
 0x160   :  { %v1486_v37 = vsel %vm1485_vm0, %v1483_v36, 0.0  ;;  %v1484_v38 = vadd.f32 %v1700_v34, %v1476_v35 }
 0x161   :  { %1487 = vadd.xlane.f32.xlu0 %v1486_v37 }
 0x162   :  { %v1489_v39 = vsel %vm1485_vm0, %v1484_v38, 0.0 }
 0x165   :  { %1490 = vadd.xlane.f32.xlu0 %v1489_v39 }
 0x1ee   :  { %v1488_v40 = vpop.xlane.xlu0 %1487 }
 0x1ef   :  { %v1493_v41 = vmul.f32 0.03125, %v1488_v40 }
 0x1f1   :  { %v1495_v42 = vsub.f32 %v1483_v36, %v1493_v41 }
 0x1f2   :  { %v1491_v43 = vpop.xlane.xlu0 %1490 }
 0x1f3   :  { %v1494_v44 = vmul.f32 0.03125, %v1491_v43  ;;  %v1497_v45 = vmul.f32 %v1495_v42, %v1495_v42 }
 0x1f5   :  { %v1496_v46 = vsub.f32 %v1484_v38, %v1494_v44  ;;  %v1499_v47 = vsel %vm1485_vm0, %v1497_v45, 0.0 }
 0x1f6   :  { %1500 = vadd.xlane.f32.xlu1 %v1499_v47 }
 0x1f7   :  { %v1498_v48 = vmul.f32 %v1496_v46, %v1496_v46 }
 0x1f9   :  { %v1502_v49 = vsel %vm1485_vm0, %v1498_v48, 0.0 }
 0x1fa   :  { %1503 = vadd.xlane.f32.xlu1 %v1502_v49 }
 0x283   :  { %v1501_v50 = vpop.xlane.xlu1 %1500 }
 0x284   :  { %v1505_v51 = vmul.f32 0.03125, %v1501_v50 }
 0x286   :  { %v1507_v52 = vadd.f32 1e-05, %v1505_v51 }
 0x287   :  { %v1504_v53 = vpop.xlane.xlu1 %1503 }
 0x288   :  { %2005 = vrsqrt.f32 %v1507_v52  ;;  %v1506_v54 = vmul.f32 0.03125, %v1504_v53 }
 0x28a   :  { %v1508_v55 = vadd.f32 1e-05, %v1506_v54 }
 0x28c   :  { %2007 = vrsqrt.f32 %v1508_v55 }
 0x292   :  { %v2006_v56 = vpop.eup %2005 }
 0x293   :  { %v1511_v58 = vmul.f32 %v2006_v56, %v1495_v42 }
 0x295   :  { %v1520_v60 = vmul.f32 %v1691_v57, %v1511_v58 }
 0x296   :  { %v2008_v61 = vpop.eup %2007 }
 0x297   :  { %v1529_v62 = vadd.f32 %v1692_v59, %v1520_v60  ;;  %v1512_v63 = vmul.f32 %v2008_v61, %v1496_v46 }
 0x299   :  { %v1695_v0 = vpack.c.bf16 %v1529_v62, %v1529_v62  ;;  %v1521_v1 = vmul.f32 %v1691_v57, %v1512_v63 }
 0x29b   :  { %1540 = vst.msk [vmem:[%s2504_s6] sm:$0xf] %vm1539_vm1, %v1695_v0  ;;  %v1530_v2 = vadd.f32 %v1692_v59, %v1521_v1 }
 0x29d   :  { %v1696_v3 = vpack.c.bf16 %v1530_v2, %v1530_v2 }
 0x29f   :  { %1541 = vst.msk [vmem:[%s2504_s6 + $0x4] sm:$0xf] %vm1539_vm1, %v1696_v3 }

</bundles_post_ra>
